<compile_context>
chip_gen: v7x
topology: tpu7x:2x2x1
jax: 0.10.0
libtpu: 0.0.40
codegen_flags: <defaults>
</compile_context>

<pallas_src>
import functools
import numpy as np

import jax
import jax.numpy as jnp
from jax.experimental import pallas as pl
from jax.experimental.pallas import tpu as pltpu


# ----------------------------------------------------------------------------
# Positional encoding (pre-computed constant; glue, not a hot path)
# ----------------------------------------------------------------------------
def get_position_encoding(seq_len, d, n=10000):
    P = np.zeros((seq_len, d), dtype=np.float32)
    for k in range(seq_len):
        for i in range(d // 2):
            denom = np.power(n, 2 * i / d)
            P[k, 2 * i] = np.sin(k / denom)
            P[k, 2 * i + 1] = np.cos(k / denom)
    return jnp.asarray(P, dtype=jnp.float32)


def _triu_mask(rows, cols):
    """mask = triu(ones, diagonal=1) * -1e9 — matches the PyTorch module,
    which applies it unconditionally (even on cross-attention)."""
    r = jax.lax.broadcasted_iota(jnp.int32, (rows, cols), 0)
    c = jax.lax.broadcasted_iota(jnp.int32, (rows, cols), 1)
    return jnp.where(c > r, jnp.float32(-1e9), jnp.float32(0.0))


# ----------------------------------------------------------------------------
# In-kernel multi-head attention helper (values, not refs)
# ----------------------------------------------------------------------------
def _attention(q, k, v, mask, num_heads, inv_scale):
    """q: (Sq, D), k/v: (Sk, D), mask: (Sq, Sk)."""
    D = q.shape[1]
    hd = D // num_heads
    outs = []
    for h in range(num_heads):          # static unroll; heads stay in vregs
        sl = slice(h * hd, (h + 1) * hd)
        qh, kh, vh = q[:, sl], k[:, sl], v[:, sl]
        s = jnp.dot(qh, kh.T, preferred_element_type=jnp.float32) * inv_scale
        s = s + mask
        m = jnp.max(s, axis=-1, keepdims=True)
        e = jnp.exp(s - m)
        # EUP reciprocal instead of a VALU divide.
        p = e * pl.reciprocal(jnp.sum(e, axis=-1, keepdims=True), approx=True)
        outs.append(jnp.dot(p, vh, preferred_element_type=jnp.float32))
    # == attention.transpose(0,1).contiguous().view(seq_len, -1) in PyTorch
    return jnp.concatenate(outs, axis=-1)


# ----------------------------------------------------------------------------
# Single fused kernel: whole forward pass, everything VMEM-resident
# ----------------------------------------------------------------------------
def _transformer_kernel(
    pxl_ref, wemb_ref, pe_enc_ref, pe_dec_ref,
    in_wt_ref, in_b_ref,
    enc_wqkv_ref, enc_bqkv_ref, enc_w1_ref, enc_b1_ref, enc_w2_ref, enc_b2_ref,
    dec_wq_ref, dec_bq_ref, dec_wkv_ref, dec_bkv_ref,
    dec_wo_ref, dec_bo_ref, dec_w1_ref, dec_b1_ref, dec_w2_ref, dec_b2_ref,
    out_ref,
    *, num_heads, num_encoder_layers, emb_dim, new_dim,
):
    f32 = jnp.float32

    # ---- input projection (the nn.Linear created inside forward()) ----
    x = jnp.dot(pxl_ref[...], in_wt_ref[...], preferred_element_type=f32) + in_b_ref[...]

    Ps = x.shape[0]
    Ws = wemb_ref.shape[0]

    # Masks built once (constant iota/compare work hoisted out of the loop).
    enc_mask = _triu_mask(Ps, Ps)
    dec_mask = _triu_mask(Ws, Ps)

    # ---- encoder stack (PE re-added every layer, as in the reference) ----
    inv_scale_enc = 1.0 / (float(emb_dim // num_heads) ** 0.5)
    pe_enc = pe_enc_ref[...]
    for layer in range(num_encoder_layers):
        xe = x + pe_enc
        # fused QKV projection: one (S, D) x (D, 3D) matmul
        qkv = (jnp.dot(xe, enc_wqkv_ref[layer], preferred_element_type=f32)
               + enc_bqkv_ref[layer])
        q = qkv[:, :emb_dim]
        k = qkv[:, emb_dim:2 * emb_dim]
        v = qkv[:, 2 * emb_dim:]
        attn = _attention(q, k, v, enc_mask, num_heads, inv_scale_enc)
        # NOTE: attn_embedding_bias exists as a module parameter but is never
        # used in Encoder.forward(), so it is intentionally omitted.
        h = jnp.maximum(
            jnp.dot(attn, enc_w1_ref[layer], preferred_element_type=f32)
            + enc_b1_ref[layer], 0.0)
        x = (jnp.dot(h, enc_w2_ref[layer], preferred_element_type=f32)
             + enc_b2_ref[layer])

    # ---- decoder (only the LAST decoder layer's output is live) ----
    inv_scale_dec = 1.0 / (float(new_dim // num_heads) ** 0.5)
    wq_in = wemb_ref[...] + pe_dec_ref[...]
    q = jnp.dot(wq_in, dec_wq_ref[...], preferred_element_type=f32) + dec_bq_ref[...]
    # fused K/V projection from the encoder output
    kv = jnp.dot(x, dec_wkv_ref[...], preferred_element_type=f32) + dec_bkv_ref[...]
    k = kv[:, :new_dim]
    v = kv[:, new_dim:]
    attn = _attention(q, k, v, dec_mask, num_heads, inv_scale_dec)
    og = jnp.dot(attn, dec_wo_ref[...], preferred_element_type=f32) + dec_bo_ref[...]
    h = jnp.maximum(
        jnp.dot(og, dec_w1_ref[...], preferred_element_type=f32) + dec_b1_ref[...],
        0.0)
    out_ref[...] = (jnp.dot(h, dec_w2_ref[...], preferred_element_type=f32)
                    + dec_b2_ref[...])


# ----------------------------------------------------------------------------
# Forward wrapper: packs weights (fused QKV, pre-transposed) and launches the
# single pallas_call.
# ----------------------------------------------------------------------------
def transformer_forward(params, pxl_input, token_ids, num_heads):
    Ps, _ = pxl_input.shape
    Ws = token_ids.shape[0]
    emb_dim = params["in_w"].shape[0]
    Wemb_dim = params["emb_table"].shape[1]
    num_encoder_layers = len(params["encoders"])
    dp = params["decoders"][-1]        # earlier decoder layers are dead compute
    new_dim = dp["wq"].shape[0]

    # Token embedding lookup (glue; plain gather, matches nn.Embedding).
    wemb = params["emb_table"][token_ids]

    # Positional-encoding constants (computed once per shape).
    pe_enc = get_position_encoding(Ps, emb_dim)
    pe_dec = get_position_encoding(Ws, Wemb_dim)

    # ---- one-time weight packing: fused QKV, transposed to (Din, Dout) ----
    in_wt = params["in_w"].T
    in_b = params["in_b"].reshape(1, emb_dim)

    enc_wqkv = jnp.stack([
        jnp.concatenate([p["wq"], p["wk"], p["wv"]], axis=0).T
        for p in params["encoders"]])                       # (L, D, 3D)
    enc_bqkv = jnp.stack([
        jnp.concatenate([p["bq"], p["bk"], p["bv"]]).reshape(1, 3 * emb_dim)
        for p in params["encoders"]])                       # (L, 1, 3D)
    enc_w1 = jnp.stack([p["w1"].T for p in params["encoders"]])      # (L, D, FF)
    enc_b1 = jnp.stack([p["b1"].reshape(1, -1) for p in params["encoders"]])
    enc_w2 = jnp.stack([p["w2"].T for p in params["encoders"]])      # (L, FF, D)
    enc_b2 = jnp.stack([p["b2"].reshape(1, -1) for p in params["encoders"]])

    dec_wq = dp["wq"].T
    dec_bq = dp["bq"].reshape(1, -1)
    dec_wkv = jnp.concatenate([dp["wk"], dp["wv"]], axis=0).T        # (Pemb, 2*new)
    dec_bkv = jnp.concatenate([dp["bk"], dp["bv"]]).reshape(1, -1)
    dec_wo = dp["wo"].T
    dec_bo = dp["bo"].reshape(1, -1)
    dec_w1 = dp["w1"].T
    dec_b1 = dp["b1"].reshape(1, -1)
    dec_w2 = dp["w2"].T
    dec_b2 = dp["b2"].reshape(1, -1)

    kern = functools.partial(
        _transformer_kernel,
        num_heads=num_heads,
        num_encoder_layers=num_encoder_layers,
        emb_dim=emb_dim,
        new_dim=new_dim,
    )

    inputs = (pxl_input, wemb, pe_enc, pe_dec,
              in_wt, in_b,
              enc_wqkv, enc_bqkv, enc_w1, enc_b1, enc_w2, enc_b2,
              dec_wq, dec_bq, dec_wkv, dec_bkv,
              dec_wo, dec_bo, dec_w1, dec_b1, dec_w2, dec_b2)

    vmem_spec = pl.BlockSpec(memory_space=pltpu.MemorySpace.VMEM)
    return pl.pallas_call(
        kern,
        out_shape=jax.ShapeDtypeStruct((Ws, Wemb_dim), jnp.float32),
        in_specs=[vmem_spec] * len(inputs),
        out_specs=vmem_spec,
    )(*inputs)


# ----------------------------------------------------------------------------
# Deterministic parameter initialization (PyTorch nn.Linear layout / scheme)
# ----------------------------------------------------------------------------
def init_linear_params(key, out_dim, in_dim):
    k1, k2 = jax.random.split(key)
    bound = 1.0 / np.sqrt(in_dim)
    w = jax.random.uniform(k1, (out_dim, in_dim), jnp.float32, -bound, bound)
    b = jax.random.uniform(k2, (out_dim,), jnp.float32, -bound, bound)
    return w, b


def init_encoder_params(key, emb_dim, hidden_dim_ff):
    ks = jax.random.split(key, 5)
    p = {}
    p["wq"], p["bq"] = init_linear_params(ks[0], emb_dim, emb_dim)
    p["wk"], p["bk"] = init_linear_params(ks[1], emb_dim, emb_dim)
    p["wv"], p["bv"] = init_linear_params(ks[2], emb_dim, emb_dim)
    p["w1"], p["b1"] = init_linear_params(ks[3], hidden_dim_ff, emb_dim)
    p["w2"], p["b2"] = init_linear_params(ks[4], emb_dim, hidden_dim_ff)
    return p


def init_decoder_params(key, Wemb_dim, Pemb_dim, new_dim, hidden_dim_ff):
    ks = jax.random.split(key, 6)
    p = {}
    p["wq"], p["bq"] = init_linear_params(ks[0], new_dim, Wemb_dim)
    p["wk"], p["bk"] = init_linear_params(ks[1], new_dim, Pemb_dim)
    p["wv"], p["bv"] = init_linear_params(ks[2], new_dim, Pemb_dim)
    p["wo"], p["bo"] = init_linear_params(ks[3], Wemb_dim, new_dim)
    p["w1"], p["b1"] = init_linear_params(ks[4], hidden_dim_ff, Wemb_dim)
    p["w2"], p["b2"] = init_linear_params(ks[5], Wemb_dim, hidden_dim_ff)
    return p


if __name__ == "__main__":
    # Small, consistent hyper-parameters.
    pxl_size = 16
    emb_dim = 32          # encoder embedding dim (== Pemb_dim, feeds decoder K/V)
    num_heads = 4
    hidden_dim_ff = 64
    Wemb_dim = 32
    Pemb_dim = emb_dim
    new_dim = 32
    voc_size = 50
    num_encoder_layers = 2
    num_decoder_layers = 2
    Pseq_len = 8          # "pixel" sequence length
    Wseq_len = 8          # token sequence length

    key = jax.random.PRNGKey(0)
    k_in, k_emb, k_enc, k_dec, k_x, k_tok = jax.random.split(key, 6)

    params = {}
    params["in_w"], params["in_b"] = init_linear_params(k_in, emb_dim, pxl_size)
    params["emb_table"] = jax.random.normal(k_emb, (voc_size, Wemb_dim), jnp.float32)
    params["encoders"] = [
        init_encoder_params(k, emb_dim, hidden_dim_ff)
        for k in jax.random.split(k_enc, num_encoder_layers)
    ]
    params["decoders"] = [
        init_decoder_params(k, Wemb_dim, Pemb_dim, new_dim, hidden_dim_ff)
        for k in jax.random.split(k_dec, num_decoder_layers)
    ]

    pxl_input = jax.random.normal(k_x, (Pseq_len, pxl_size), jnp.float32)
    token_ids = jax.random.randint(k_tok, (Wseq_len,), 0, voc_size, jnp.int32)

    fwd = jax.jit(functools.partial(transformer_forward, num_heads=num_heads))
    out = fwd(params, pxl_input, token_ids)
    out = jax.block_until_ready(out)
    assert out.shape == (Wseq_len, Wemb_dim), out.shape
    assert bool(jnp.all(jnp.isfinite(out)))
    print("KERNEL_OK")
</pallas_src>

<mosaic_0001>
module attributes {stable_mosaic.version = 11 : i64} {
  func.func @_transformer_kernel(%arg0: memref<8x16xf32, #tpu.memory_space<vmem>>, %arg1: memref<8x32xf32, #tpu.memory_space<vmem>>, %arg2: memref<8x32xf32, #tpu.memory_space<vmem>>, %arg3: memref<8x32xf32, #tpu.memory_space<vmem>>, %arg4: memref<16x32xf32, #tpu.memory_space<vmem>>, %arg5: memref<1x32xf32, #tpu.memory_space<vmem>>, %arg6: memref<2x32x96xf32, #tpu.memory_space<vmem>>, %arg7: memref<2x1x96xf32, #tpu.memory_space<vmem>>, %arg8: memref<2x32x64xf32, #tpu.memory_space<vmem>>, %arg9: memref<2x1x64xf32, #tpu.memory_space<vmem>>, %arg10: memref<2x64x32xf32, #tpu.memory_space<vmem>>, %arg11: memref<2x1x32xf32, #tpu.memory_space<vmem>>, %arg12: memref<32x32xf32, #tpu.memory_space<vmem>>, %arg13: memref<1x32xf32, #tpu.memory_space<vmem>>, %arg14: memref<32x64xf32, #tpu.memory_space<vmem>>, %arg15: memref<1x64xf32, #tpu.memory_space<vmem>>, %arg16: memref<32x32xf32, #tpu.memory_space<vmem>>, %arg17: memref<1x32xf32, #tpu.memory_space<vmem>>, %arg18: memref<32x64xf32, #tpu.memory_space<vmem>>, %arg19: memref<1x64xf32, #tpu.memory_space<vmem>>, %arg20: memref<64x32xf32, #tpu.memory_space<vmem>>, %arg21: memref<1x32xf32, #tpu.memory_space<vmem>>, %arg22: memref<8x32xf32, #tpu.memory_space<vmem>>) attributes {dimension_semantics = [], scalar_prefetch = 0 : i64, scratch_operands = 0 : i64, tpu.core_type = #tpu.core_type<tc>} {
    %c0 = arith.constant 0 : index
    %c0_0 = arith.constant 0 : index
    %0 = vector.load %arg0[%c0, %c0_0] : memref<8x16xf32, #tpu.memory_space<vmem>>, vector<8x16xf32>
    %c0_1 = arith.constant 0 : index
    %c0_2 = arith.constant 0 : index
    %1 = vector.load %arg4[%c0_1, %c0_2] : memref<16x32xf32, #tpu.memory_space<vmem>>, vector<16x32xf32>
    %cst = arith.constant dense<0.000000e+00> : vector<8x32xf32>
    %2 = tpu.matmul %0, %1, %cst {dimension_numbers = #tpu.dot_dimension_numbers<[1], [0], [0], [1], [0, 0, 1, 1], [], []>} : vector<8x16xf32>, vector<16x32xf32>, vector<8x32xf32> -> vector<8x32xf32>
    %c0_3 = arith.constant 0 : index
    %c0_4 = arith.constant 0 : index
    %3 = vector.load %arg5[%c0_3, %c0_4] : memref<1x32xf32, #tpu.memory_space<vmem>>, vector<1x32xf32>
    %4 = vector.broadcast %3 : vector<1x32xf32> to vector<8x32xf32>
    %5 = arith.addf %2, %4 : vector<8x32xf32>
    %6 = tpu.iota {dimensions = array<i32: 0>} : vector<8x8xi32>
    %7 = tpu.iota {dimensions = array<i32: 1>} : vector<8x8xi32>
    %8 = arith.cmpi sgt, %7, %6 : vector<8x8xi32>
    %cst_5 = arith.constant -1.000000e+09 : f32
    %cst_6 = arith.constant 0.000000e+00 : f32
    %9 = vector.broadcast %cst_5 : f32 to vector<8x8xf32>
    %10 = vector.broadcast %cst_6 : f32 to vector<8x8xf32>
    %11 = arith.select %8, %9, %10 : vector<8x8xi1>, vector<8x8xf32>
    %12 = tpu.iota {dimensions = array<i32: 0>} : vector<8x8xi32>
    %13 = tpu.iota {dimensions = array<i32: 1>} : vector<8x8xi32>
    %14 = arith.cmpi sgt, %13, %12 : vector<8x8xi32>
    %cst_7 = arith.constant -1.000000e+09 : f32
    %cst_8 = arith.constant 0.000000e+00 : f32
    %15 = vector.broadcast %cst_7 : f32 to vector<8x8xf32>
    %16 = vector.broadcast %cst_8 : f32 to vector<8x8xf32>
    %17 = arith.select %14, %15, %16 : vector<8x8xi1>, vector<8x8xf32>
    %c0_9 = arith.constant 0 : index
    %c0_10 = arith.constant 0 : index
    %18 = vector.load %arg2[%c0_9, %c0_10] : memref<8x32xf32, #tpu.memory_space<vmem>>, vector<8x32xf32>
    %19 = arith.addf %5, %18 : vector<8x32xf32>
    %c0_11 = arith.constant 0 : index
    %c0_12 = arith.constant 0 : index
    %c0_13 = arith.constant 0 : index
    %20 = vector.load %arg6[%c0_11, %c0_12, %c0_13] : memref<2x32x96xf32, #tpu.memory_space<vmem>>, vector<1x32x96xf32>
    %21 = vector.shape_cast %20 : vector<1x32x96xf32> to vector<32x96xf32>
    %cst_14 = arith.constant dense<0.000000e+00> : vector<8x96xf32>
    %22 = tpu.matmul %19, %21, %cst_14 {dimension_numbers = #tpu.dot_dimension_numbers<[1], [0], [0], [1], [0, 0, 1, 1], [], []>} : vector<8x32xf32>, vector<32x96xf32>, vector<8x96xf32> -> vector<8x96xf32>
    %c0_15 = arith.constant 0 : index
    %c0_16 = arith.constant 0 : index
    %c0_17 = arith.constant 0 : index
    %23 = vector.load %arg7[%c0_15, %c0_16, %c0_17] : memref<2x1x96xf32, #tpu.memory_space<vmem>>, vector<1x1x96xf32>
    %24 = vector.shape_cast %23 : vector<1x1x96xf32> to vector<1x96xf32>
    %25 = vector.broadcast %24 : vector<1x96xf32> to vector<8x96xf32>
    %26 = arith.addf %22, %25 : vector<8x96xf32>
    %27 = vector.extract_strided_slice %26 {offsets = [0, 0], sizes = [8, 32], strides = [1, 1]} : vector<8x96xf32> to vector<8x32xf32>
    %28 = vector.extract_strided_slice %26 {offsets = [0, 32], sizes = [8, 32], strides = [1, 1]} : vector<8x96xf32> to vector<8x32xf32>
    %29 = vector.extract_strided_slice %26 {offsets = [0, 64], sizes = [8, 32], strides = [1, 1]} : vector<8x96xf32> to vector<8x32xf32>
    %30 = vector.extract_strided_slice %27 {offsets = [0, 0], sizes = [8, 8], strides = [1, 1]} : vector<8x32xf32> to vector<8x8xf32>
    %31 = vector.extract_strided_slice %28 {offsets = [0, 0], sizes = [8, 8], strides = [1, 1]} : vector<8x32xf32> to vector<8x8xf32>
    %32 = vector.extract_strided_slice %29 {offsets = [0, 0], sizes = [8, 8], strides = [1, 1]} : vector<8x32xf32> to vector<8x8xf32>
    %33 = tpu.transpose %31, [1, 0] : vector<8x8xf32> -> vector<8x8xf32>
    %cst_18 = arith.constant dense<0.000000e+00> : vector<8x8xf32>
    %34 = tpu.matmul %30, %33, %cst_18 {dimension_numbers = #tpu.dot_dimension_numbers<[1], [0], [0], [1], [0, 0, 1, 1], [], []>} : vector<8x8xf32>, vector<8x8xf32>, vector<8x8xf32> -> vector<8x8xf32>
    %cst_19 = arith.constant 0.353553385 : f32
    %35 = vector.broadcast %cst_19 : f32 to vector<8x8xf32>
    %36 = arith.mulf %34, %35 : vector<8x8xf32>
    %37 = arith.addf %36, %11 : vector<8x8xf32>
    %cst_20 = arith.constant dense<0xFF800000> : vector<8xf32>
    %38 = vector.multi_reduction <maximumf>, %37, %cst_20 [1] : vector<8x8xf32> to vector<8xf32>
    %39 = vector.shape_cast %38 : vector<8xf32> to vector<8x1xf32>
    %40 = vector.broadcast %39 : vector<8x1xf32> to vector<8x8xf32>
    %41 = arith.subf %37, %40 : vector<8x8xf32>
    %42 = math.exp %41 : vector<8x8xf32>
    %cst_21 = arith.constant dense<0.000000e+00> : vector<8xf32>
    %43 = vector.multi_reduction <add>, %42, %cst_21 [1] : vector<8x8xf32> to vector<8xf32>
    %44 = vector.shape_cast %43 : vector<8xf32> to vector<8x1xf32>
    %45 = tpu.reciprocal %44 {approx = true} : vector<8x1xf32> -> vector<8x1xf32>
    %46 = vector.broadcast %45 : vector<8x1xf32> to vector<8x8xf32>
    %47 = arith.mulf %42, %46 : vector<8x8xf32>
    %cst_22 = arith.constant dense<0.000000e+00> : vector<8x8xf32>
    %48 = tpu.matmul %47, %32, %cst_22 {dimension_numbers = #tpu.dot_dimension_numbers<[1], [0], [0], [1], [0, 0, 1, 1], [], []>} : vector<8x8xf32>, vector<8x8xf32>, vector<8x8xf32> -> vector<8x8xf32>
    %49 = vector.extract_strided_slice %27 {offsets = [0, 8], sizes = [8, 8], strides = [1, 1]} : vector<8x32xf32> to vector<8x8xf32>
    %50 = vector.extract_strided_slice %28 {offsets = [0, 8], sizes = [8, 8], strides = [1, 1]} : vector<8x32xf32> to vector<8x8xf32>
    %51 = vector.extract_strided_slice %29 {offsets = [0, 8], sizes = [8, 8], strides = [1, 1]} : vector<8x32xf32> to vector<8x8xf32>
    %52 = tpu.transpose %50, [1, 0] : vector<8x8xf32> -> vector<8x8xf32>
    %cst_23 = arith.constant dense<0.000000e+00> : vector<8x8xf32>
    %53 = tpu.matmul %49, %52, %cst_23 {dimension_numbers = #tpu.dot_dimension_numbers<[1], [0], [0], [1], [0, 0, 1, 1], [], []>} : vector<8x8xf32>, vector<8x8xf32>, vector<8x8xf32> -> vector<8x8xf32>
    %cst_24 = arith.constant 0.353553385 : f32
    %54 = vector.broadcast %cst_24 : f32 to vector<8x8xf32>
    %55 = arith.mulf %53, %54 : vector<8x8xf32>
    %56 = arith.addf %55, %11 : vector<8x8xf32>
    %cst_25 = arith.constant dense<0xFF800000> : vector<8xf32>
    %57 = vector.multi_reduction <maximumf>, %56, %cst_25 [1] : vector<8x8xf32> to vector<8xf32>
    %58 = vector.shape_cast %57 : vector<8xf32> to vector<8x1xf32>
    %59 = vector.broadcast %58 : vector<8x1xf32> to vector<8x8xf32>
    %60 = arith.subf %56, %59 : vector<8x8xf32>
    %61 = math.exp %60 : vector<8x8xf32>
    %cst_26 = arith.constant dense<0.000000e+00> : vector<8xf32>
    %62 = vector.multi_reduction <add>, %61, %cst_26 [1] : vector<8x8xf32> to vector<8xf32>
    %63 = vector.shape_cast %62 : vector<8xf32> to vector<8x1xf32>
    %64 = tpu.reciprocal %63 {approx = true} : vector<8x1xf32> -> vector<8x1xf32>
    %65 = vector.broadcast %64 : vector<8x1xf32> to vector<8x8xf32>
    %66 = arith.mulf %61, %65 : vector<8x8xf32>
    %cst_27 = arith.constant dense<0.000000e+00> : vector<8x8xf32>
    %67 = tpu.matmul %66, %51, %cst_27 {dimension_numbers = #tpu.dot_dimension_numbers<[1], [0], [0], [1], [0, 0, 1, 1], [], []>} : vector<8x8xf32>, vector<8x8xf32>, vector<8x8xf32> -> vector<8x8xf32>
    %68 = vector.extract_strided_slice %27 {offsets = [0, 16], sizes = [8, 8], strides = [1, 1]} : vector<8x32xf32> to vector<8x8xf32>
    %69 = vector.extract_strided_slice %28 {offsets = [0, 16], sizes = [8, 8], strides = [1, 1]} : vector<8x32xf32> to vector<8x8xf32>
    %70 = vector.extract_strided_slice %29 {offsets = [0, 16], sizes = [8, 8], strides = [1, 1]} : vector<8x32xf32> to vector<8x8xf32>
    %71 = tpu.transpose %69, [1, 0] : vector<8x8xf32> -> vector<8x8xf32>
    %cst_28 = arith.constant dense<0.000000e+00> : vector<8x8xf32>
    %72 = tpu.matmul %68, %71, %cst_28 {dimension_numbers = #tpu.dot_dimension_numbers<[1], [0], [0], [1], [0, 0, 1, 1], [], []>} : vector<8x8xf32>, vector<8x8xf32>, vector<8x8xf32> -> vector<8x8xf32>
    %cst_29 = arith.constant 0.353553385 : f32
    %73 = vector.broadcast %cst_29 : f32 to vector<8x8xf32>
    %74 = arith.mulf %72, %73 : vector<8x8xf32>
    %75 = arith.addf %74, %11 : vector<8x8xf32>
    %cst_30 = arith.constant dense<0xFF800000> : vector<8xf32>
    %76 = vector.multi_reduction <maximumf>, %75, %cst_30 [1] : vector<8x8xf32> to vector<8xf32>
    %77 = vector.shape_cast %76 : vector<8xf32> to vector<8x1xf32>
    %78 = vector.broadcast %77 : vector<8x1xf32> to vector<8x8xf32>
    %79 = arith.subf %75, %78 : vector<8x8xf32>
    %80 = math.exp %79 : vector<8x8xf32>
    %cst_31 = arith.constant dense<0.000000e+00> : vector<8xf32>
    %81 = vector.multi_reduction <add>, %80, %cst_31 [1] : vector<8x8xf32> to vector<8xf32>
    %82 = vector.shape_cast %81 : vector<8xf32> to vector<8x1xf32>
    %83 = tpu.reciprocal %82 {approx = true} : vector<8x1xf32> -> vector<8x1xf32>
    %84 = vector.broadcast %83 : vector<8x1xf32> to vector<8x8xf32>
    %85 = arith.mulf %80, %84 : vector<8x8xf32>
    %cst_32 = arith.constant dense<0.000000e+00> : vector<8x8xf32>
    %86 = tpu.matmul %85, %70, %cst_32 {dimension_numbers = #tpu.dot_dimension_numbers<[1], [0], [0], [1], [0, 0, 1, 1], [], []>} : vector<8x8xf32>, vector<8x8xf32>, vector<8x8xf32> -> vector<8x8xf32>
    %87 = vector.extract_strided_slice %27 {offsets = [0, 24], sizes = [8, 8], strides = [1, 1]} : vector<8x32xf32> to vector<8x8xf32>
    %88 = vector.extract_strided_slice %28 {offsets = [0, 24], sizes = [8, 8], strides = [1, 1]} : vector<8x32xf32> to vector<8x8xf32>
    %89 = vector.extract_strided_slice %29 {offsets = [0, 24], sizes = [8, 8], strides = [1, 1]} : vector<8x32xf32> to vector<8x8xf32>
    %90 = tpu.transpose %88, [1, 0] : vector<8x8xf32> -> vector<8x8xf32>
    %cst_33 = arith.constant dense<0.000000e+00> : vector<8x8xf32>
    %91 = tpu.matmul %87, %90, %cst_33 {dimension_numbers = #tpu.dot_dimension_numbers<[1], [0], [0], [1], [0, 0, 1, 1], [], []>} : vector<8x8xf32>, vector<8x8xf32>, vector<8x8xf32> -> vector<8x8xf32>
    %cst_34 = arith.constant 0.353553385 : f32
    %92 = vector.broadcast %cst_34 : f32 to vector<8x8xf32>
    %93 = arith.mulf %91, %92 : vector<8x8xf32>
    %94 = arith.addf %93, %11 : vector<8x8xf32>
    %cst_35 = arith.constant dense<0xFF800000> : vector<8xf32>
    %95 = vector.multi_reduction <maximumf>, %94, %cst_35 [1] : vector<8x8xf32> to vector<8xf32>
    %96 = vector.shape_cast %95 : vector<8xf32> to vector<8x1xf32>
    %97 = vector.broadcast %96 : vector<8x1xf32> to vector<8x8xf32>
    %98 = arith.subf %94, %97 : vector<8x8xf32>
    %99 = math.exp %98 : vector<8x8xf32>
    %cst_36 = arith.constant dense<0.000000e+00> : vector<8xf32>
    %100 = vector.multi_reduction <add>, %99, %cst_36 [1] : vector<8x8xf32> to vector<8xf32>
    %101 = vector.shape_cast %100 : vector<8xf32> to vector<8x1xf32>
    %102 = tpu.reciprocal %101 {approx = true} : vector<8x1xf32> -> vector<8x1xf32>
    %103 = vector.broadcast %102 : vector<8x1xf32> to vector<8x8xf32>
    %104 = arith.mulf %99, %103 : vector<8x8xf32>
    %cst_37 = arith.constant dense<0.000000e+00> : vector<8x8xf32>
    %105 = tpu.matmul %104, %89, %cst_37 {dimension_numbers = #tpu.dot_dimension_numbers<[1], [0], [0], [1], [0, 0, 1, 1], [], []>} : vector<8x8xf32>, vector<8x8xf32>, vector<8x8xf32> -> vector<8x8xf32>
    %106 = tpu.concatenate %48, %67, %86, %105 in 1 : vector<8x8xf32>, vector<8x8xf32>, vector<8x8xf32>, vector<8x8xf32> -> vector<8x32xf32>
    %c0_38 = arith.constant 0 : index
    %c0_39 = arith.constant 0 : index
    %c0_40 = arith.constant 0 : index
    %107 = vector.load %arg8[%c0_38, %c0_39, %c0_40] : memref<2x32x64xf32, #tpu.memory_space<vmem>>, vector<1x32x64xf32>
    %108 = vector.shape_cast %107 : vector<1x32x64xf32> to vector<32x64xf32>
    %cst_41 = arith.constant dense<0.000000e+00> : vector<8x64xf32>
    %109 = tpu.matmul %106, %108, %cst_41 {dimension_numbers = #tpu.dot_dimension_numbers<[1], [0], [0], [1], [0, 0, 1, 1], [], []>} : vector<8x32xf32>, vector<32x64xf32>, vector<8x64xf32> -> vector<8x64xf32>
    %c0_42 = arith.constant 0 : index
    %c0_43 = arith.constant 0 : index
    %c0_44 = arith.constant 0 : index
    %110 = vector.load %arg9[%c0_42, %c0_43, %c0_44] : memref<2x1x64xf32, #tpu.memory_space<vmem>>, vector<1x1x64xf32>
    %111 = vector.shape_cast %110 : vector<1x1x64xf32> to vector<1x64xf32>
    %112 = vector.broadcast %111 : vector<1x64xf32> to vector<8x64xf32>
    %113 = arith.addf %109, %112 : vector<8x64xf32>
    %cst_45 = arith.constant 0.000000e+00 : f32
    %114 = vector.broadcast %cst_45 : f32 to vector<8x64xf32>
    %115 = arith.maximumf %113, %114 : vector<8x64xf32>
    %c0_46 = arith.constant 0 : index
    %c0_47 = arith.constant 0 : index
    %c0_48 = arith.constant 0 : index
    %116 = vector.load %arg10[%c0_46, %c0_47, %c0_48] : memref<2x64x32xf32, #tpu.memory_space<vmem>>, vector<1x64x32xf32>
    %117 = vector.shape_cast %116 : vector<1x64x32xf32> to vector<64x32xf32>
    %cst_49 = arith.constant dense<0.000000e+00> : vector<8x32xf32>
    %118 = tpu.matmul %115, %117, %cst_49 {dimension_numbers = #tpu.dot_dimension_numbers<[1], [0], [0], [1], [0, 0, 1, 1], [], []>} : vector<8x64xf32>, vector<64x32xf32>, vector<8x32xf32> -> vector<8x32xf32>
    %c0_50 = arith.constant 0 : index
    %c0_51 = arith.constant 0 : index
    %c0_52 = arith.constant 0 : index
    %119 = vector.load %arg11[%c0_50, %c0_51, %c0_52] : memref<2x1x32xf32, #tpu.memory_space<vmem>>, vector<1x1x32xf32>
    %120 = vector.shape_cast %119 : vector<1x1x32xf32> to vector<1x32xf32>
    %121 = vector.broadcast %120 : vector<1x32xf32> to vector<8x32xf32>
    %122 = arith.addf %118, %121 : vector<8x32xf32>
    %123 = arith.addf %122, %18 : vector<8x32xf32>
    %c1 = arith.constant 1 : index
    %c0_53 = arith.constant 0 : index
    %c0_54 = arith.constant 0 : index
    %124 = vector.load %arg6[%c1, %c0_53, %c0_54] : memref<2x32x96xf32, #tpu.memory_space<vmem>>, vector<1x32x96xf32>
    %125 = vector.shape_cast %124 : vector<1x32x96xf32> to vector<32x96xf32>
    %cst_55 = arith.constant dense<0.000000e+00> : vector<8x96xf32>
    %126 = tpu.matmul %123, %125, %cst_55 {dimension_numbers = #tpu.dot_dimension_numbers<[1], [0], [0], [1], [0, 0, 1, 1], [], []>} : vector<8x32xf32>, vector<32x96xf32>, vector<8x96xf32> -> vector<8x96xf32>
    %c1_56 = arith.constant 1 : index
    %c0_57 = arith.constant 0 : index
    %c0_58 = arith.constant 0 : index
    %127 = vector.load %arg7[%c1_56, %c0_57, %c0_58] : memref<2x1x96xf32, #tpu.memory_space<vmem>>, vector<1x1x96xf32>
    %128 = vector.shape_cast %127 : vector<1x1x96xf32> to vector<1x96xf32>
    %129 = vector.broadcast %128 : vector<1x96xf32> to vector<8x96xf32>
    %130 = arith.addf %126, %129 : vector<8x96xf32>
    %131 = vector.extract_strided_slice %130 {offsets = [0, 0], sizes = [8, 32], strides = [1, 1]} : vector<8x96xf32> to vector<8x32xf32>
    %132 = vector.extract_strided_slice %130 {offsets = [0, 32], sizes = [8, 32], strides = [1, 1]} : vector<8x96xf32> to vector<8x32xf32>
    %133 = vector.extract_strided_slice %130 {offsets = [0, 64], sizes = [8, 32], strides = [1, 1]} : vector<8x96xf32> to vector<8x32xf32>
    %134 = vector.extract_strided_slice %131 {offsets = [0, 0], sizes = [8, 8], strides = [1, 1]} : vector<8x32xf32> to vector<8x8xf32>
    %135 = vector.extract_strided_slice %132 {offsets = [0, 0], sizes = [8, 8], strides = [1, 1]} : vector<8x32xf32> to vector<8x8xf32>
    %136 = vector.extract_strided_slice %133 {offsets = [0, 0], sizes = [8, 8], strides = [1, 1]} : vector<8x32xf32> to vector<8x8xf32>
    %137 = tpu.transpose %135, [1, 0] : vector<8x8xf32> -> vector<8x8xf32>
    %cst_59 = arith.constant dense<0.000000e+00> : vector<8x8xf32>
    %138 = tpu.matmul %134, %137, %cst_59 {dimension_numbers = #tpu.dot_dimension_numbers<[1], [0], [0], [1], [0, 0, 1, 1], [], []>} : vector<8x8xf32>, vector<8x8xf32>, vector<8x8xf32> -> vector<8x8xf32>
    %cst_60 = arith.constant 0.353553385 : f32
    %139 = vector.broadcast %cst_60 : f32 to vector<8x8xf32>
    %140 = arith.mulf %138, %139 : vector<8x8xf32>
    %141 = arith.addf %140, %11 : vector<8x8xf32>
    %cst_61 = arith.constant dense<0xFF800000> : vector<8xf32>
    %142 = vector.multi_reduction <maximumf>, %141, %cst_61 [1] : vector<8x8xf32> to vector<8xf32>
    %143 = vector.shape_cast %142 : vector<8xf32> to vector<8x1xf32>
    %144 = vector.broadcast %143 : vector<8x1xf32> to vector<8x8xf32>
    %145 = arith.subf %141, %144 : vector<8x8xf32>
    %146 = math.exp %145 : vector<8x8xf32>
    %cst_62 = arith.constant dense<0.000000e+00> : vector<8xf32>
    %147 = vector.multi_reduction <add>, %146, %cst_62 [1] : vector<8x8xf32> to vector<8xf32>
    %148 = vector.shape_cast %147 : vector<8xf32> to vector<8x1xf32>
    %149 = tpu.reciprocal %148 {approx = true} : vector<8x1xf32> -> vector<8x1xf32>
    %150 = vector.broadcast %149 : vector<8x1xf32> to vector<8x8xf32>
    %151 = arith.mulf %146, %150 : vector<8x8xf32>
    %cst_63 = arith.constant dense<0.000000e+00> : vector<8x8xf32>
    %152 = tpu.matmul %151, %136, %cst_63 {dimension_numbers = #tpu.dot_dimension_numbers<[1], [0], [0], [1], [0, 0, 1, 1], [], []>} : vector<8x8xf32>, vector<8x8xf32>, vector<8x8xf32> -> vector<8x8xf32>
    %153 = vector.extract_strided_slice %131 {offsets = [0, 8], sizes = [8, 8], strides = [1, 1]} : vector<8x32xf32> to vector<8x8xf32>
    %154 = vector.extract_strided_slice %132 {offsets = [0, 8], sizes = [8, 8], strides = [1, 1]} : vector<8x32xf32> to vector<8x8xf32>
    %155 = vector.extract_strided_slice %133 {offsets = [0, 8], sizes = [8, 8], strides = [1, 1]} : vector<8x32xf32> to vector<8x8xf32>
    %156 = tpu.transpose %154, [1, 0] : vector<8x8xf32> -> vector<8x8xf32>
    %cst_64 = arith.constant dense<0.000000e+00> : vector<8x8xf32>
    %157 = tpu.matmul %153, %156, %cst_64 {dimension_numbers = #tpu.dot_dimension_numbers<[1], [0], [0], [1], [0, 0, 1, 1], [], []>} : vector<8x8xf32>, vector<8x8xf32>, vector<8x8xf32> -> vector<8x8xf32>
    %cst_65 = arith.constant 0.353553385 : f32
    %158 = vector.broadcast %cst_65 : f32 to vector<8x8xf32>
    %159 = arith.mulf %157, %158 : vector<8x8xf32>
    %160 = arith.addf %159, %11 : vector<8x8xf32>
    %cst_66 = arith.constant dense<0xFF800000> : vector<8xf32>
    %161 = vector.multi_reduction <maximumf>, %160, %cst_66 [1] : vector<8x8xf32> to vector<8xf32>
    %162 = vector.shape_cast %161 : vector<8xf32> to vector<8x1xf32>
    %163 = vector.broadcast %162 : vector<8x1xf32> to vector<8x8xf32>
    %164 = arith.subf %160, %163 : vector<8x8xf32>
    %165 = math.exp %164 : vector<8x8xf32>
    %cst_67 = arith.constant dense<0.000000e+00> : vector<8xf32>
    %166 = vector.multi_reduction <add>, %165, %cst_67 [1] : vector<8x8xf32> to vector<8xf32>
    %167 = vector.shape_cast %166 : vector<8xf32> to vector<8x1xf32>
    %168 = tpu.reciprocal %167 {approx = true} : vector<8x1xf32> -> vector<8x1xf32>
    %169 = vector.broadcast %168 : vector<8x1xf32> to vector<8x8xf32>
    %170 = arith.mulf %165, %169 : vector<8x8xf32>
    %cst_68 = arith.constant dense<0.000000e+00> : vector<8x8xf32>
    %171 = tpu.matmul %170, %155, %cst_68 {dimension_numbers = #tpu.dot_dimension_numbers<[1], [0], [0], [1], [0, 0, 1, 1], [], []>} : vector<8x8xf32>, vector<8x8xf32>, vector<8x8xf32> -> vector<8x8xf32>
    %172 = vector.extract_strided_slice %131 {offsets = [0, 16], sizes = [8, 8], strides = [1, 1]} : vector<8x32xf32> to vector<8x8xf32>
    %173 = vector.extract_strided_slice %132 {offsets = [0, 16], sizes = [8, 8], strides = [1, 1]} : vector<8x32xf32> to vector<8x8xf32>
    %174 = vector.extract_strided_slice %133 {offsets = [0, 16], sizes = [8, 8], strides = [1, 1]} : vector<8x32xf32> to vector<8x8xf32>
    %175 = tpu.transpose %173, [1, 0] : vector<8x8xf32> -> vector<8x8xf32>
    %cst_69 = arith.constant dense<0.000000e+00> : vector<8x8xf32>
    %176 = tpu.matmul %172, %175, %cst_69 {dimension_numbers = #tpu.dot_dimension_numbers<[1], [0], [0], [1], [0, 0, 1, 1], [], []>} : vector<8x8xf32>, vector<8x8xf32>, vector<8x8xf32> -> vector<8x8xf32>
    %cst_70 = arith.constant 0.353553385 : f32
    %177 = vector.broadcast %cst_70 : f32 to vector<8x8xf32>
    %178 = arith.mulf %176, %177 : vector<8x8xf32>
    %179 = arith.addf %178, %11 : vector<8x8xf32>
    %cst_71 = arith.constant dense<0xFF800000> : vector<8xf32>
    %180 = vector.multi_reduction <maximumf>, %179, %cst_71 [1] : vector<8x8xf32> to vector<8xf32>
    %181 = vector.shape_cast %180 : vector<8xf32> to vector<8x1xf32>
    %182 = vector.broadcast %181 : vector<8x1xf32> to vector<8x8xf32>
    %183 = arith.subf %179, %182 : vector<8x8xf32>
    %184 = math.exp %183 : vector<8x8xf32>
    %cst_72 = arith.constant dense<0.000000e+00> : vector<8xf32>
    %185 = vector.multi_reduction <add>, %184, %cst_72 [1] : vector<8x8xf32> to vector<8xf32>
    %186 = vector.shape_cast %185 : vector<8xf32> to vector<8x1xf32>
    %187 = tpu.reciprocal %186 {approx = true} : vector<8x1xf32> -> vector<8x1xf32>
    %188 = vector.broadcast %187 : vector<8x1xf32> to vector<8x8xf32>
    %189 = arith.mulf %184, %188 : vector<8x8xf32>
    %cst_73 = arith.constant dense<0.000000e+00> : vector<8x8xf32>
    %190 = tpu.matmul %189, %174, %cst_73 {dimension_numbers = #tpu.dot_dimension_numbers<[1], [0], [0], [1], [0, 0, 1, 1], [], []>} : vector<8x8xf32>, vector<8x8xf32>, vector<8x8xf32> -> vector<8x8xf32>
    %191 = vector.extract_strided_slice %131 {offsets = [0, 24], sizes = [8, 8], strides = [1, 1]} : vector<8x32xf32> to vector<8x8xf32>
    %192 = vector.extract_strided_slice %132 {offsets = [0, 24], sizes = [8, 8], strides = [1, 1]} : vector<8x32xf32> to vector<8x8xf32>
    %193 = vector.extract_strided_slice %133 {offsets = [0, 24], sizes = [8, 8], strides = [1, 1]} : vector<8x32xf32> to vector<8x8xf32>
    %194 = tpu.transpose %192, [1, 0] : vector<8x8xf32> -> vector<8x8xf32>
    %cst_74 = arith.constant dense<0.000000e+00> : vector<8x8xf32>
    %195 = tpu.matmul %191, %194, %cst_74 {dimension_numbers = #tpu.dot_dimension_numbers<[1], [0], [0], [1], [0, 0, 1, 1], [], []>} : vector<8x8xf32>, vector<8x8xf32>, vector<8x8xf32> -> vector<8x8xf32>
    %cst_75 = arith.constant 0.353553385 : f32
    %196 = vector.broadcast %cst_75 : f32 to vector<8x8xf32>
    %197 = arith.mulf %195, %196 : vector<8x8xf32>
    %198 = arith.addf %197, %11 : vector<8x8xf32>
    %cst_76 = arith.constant dense<0xFF800000> : vector<8xf32>
    %199 = vector.multi_reduction <maximumf>, %198, %cst_76 [1] : vector<8x8xf32> to vector<8xf32>
    %200 = vector.shape_cast %199 : vector<8xf32> to vector<8x1xf32>
    %201 = vector.broadcast %200 : vector<8x1xf32> to vector<8x8xf32>
    %202 = arith.subf %198, %201 : vector<8x8xf32>
    %203 = math.exp %202 : vector<8x8xf32>
    %cst_77 = arith.constant dense<0.000000e+00> : vector<8xf32>
    %204 = vector.multi_reduction <add>, %203, %cst_77 [1] : vector<8x8xf32> to vector<8xf32>
    %205 = vector.shape_cast %204 : vector<8xf32> to vector<8x1xf32>
    %206 = tpu.reciprocal %205 {approx = true} : vector<8x1xf32> -> vector<8x1xf32>
    %207 = vector.broadcast %206 : vector<8x1xf32> to vector<8x8xf32>
    %208 = arith.mulf %203, %207 : vector<8x8xf32>
    %cst_78 = arith.constant dense<0.000000e+00> : vector<8x8xf32>
    %209 = tpu.matmul %208, %193, %cst_78 {dimension_numbers = #tpu.dot_dimension_numbers<[1], [0], [0], [1], [0, 0, 1, 1], [], []>} : vector<8x8xf32>, vector<8x8xf32>, vector<8x8xf32> -> vector<8x8xf32>
    %210 = tpu.concatenate %152, %171, %190, %209 in 1 : vector<8x8xf32>, vector<8x8xf32>, vector<8x8xf32>, vector<8x8xf32> -> vector<8x32xf32>
    %c1_79 = arith.constant 1 : index
    %c0_80 = arith.constant 0 : index
    %c0_81 = arith.constant 0 : index
    %211 = vector.load %arg8[%c1_79, %c0_80, %c0_81] : memref<2x32x64xf32, #tpu.memory_space<vmem>>, vector<1x32x64xf32>
    %212 = vector.shape_cast %211 : vector<1x32x64xf32> to vector<32x64xf32>
    %cst_82 = arith.constant dense<0.000000e+00> : vector<8x64xf32>
    %213 = tpu.matmul %210, %212, %cst_82 {dimension_numbers = #tpu.dot_dimension_numbers<[1], [0], [0], [1], [0, 0, 1, 1], [], []>} : vector<8x32xf32>, vector<32x64xf32>, vector<8x64xf32> -> vector<8x64xf32>
    %c1_83 = arith.constant 1 : index
    %c0_84 = arith.constant 0 : index
    %c0_85 = arith.constant 0 : index
    %214 = vector.load %arg9[%c1_83, %c0_84, %c0_85] : memref<2x1x64xf32, #tpu.memory_space<vmem>>, vector<1x1x64xf32>
    %215 = vector.shape_cast %214 : vector<1x1x64xf32> to vector<1x64xf32>
    %216 = vector.broadcast %215 : vector<1x64xf32> to vector<8x64xf32>
    %217 = arith.addf %213, %216 : vector<8x64xf32>
    %cst_86 = arith.constant 0.000000e+00 : f32
    %218 = vector.broadcast %cst_86 : f32 to vector<8x64xf32>
    %219 = arith.maximumf %217, %218 : vector<8x64xf32>
    %c1_87 = arith.constant 1 : index
    %c0_88 = arith.constant 0 : index
    %c0_89 = arith.constant 0 : index
    %220 = vector.load %arg10[%c1_87, %c0_88, %c0_89] : memref<2x64x32xf32, #tpu.memory_space<vmem>>, vector<1x64x32xf32>
    %221 = vector.shape_cast %220 : vector<1x64x32xf32> to vector<64x32xf32>
    %cst_90 = arith.constant dense<0.000000e+00> : vector<8x32xf32>
    %222 = tpu.matmul %219, %221, %cst_90 {dimension_numbers = #tpu.dot_dimension_numbers<[1], [0], [0], [1], [0, 0, 1, 1], [], []>} : vector<8x64xf32>, vector<64x32xf32>, vector<8x32xf32> -> vector<8x32xf32>
    %c1_91 = arith.constant 1 : index
    %c0_92 = arith.constant 0 : index
    %c0_93 = arith.constant 0 : index
    %223 = vector.load %arg11[%c1_91, %c0_92, %c0_93] : memref<2x1x32xf32, #tpu.memory_space<vmem>>, vector<1x1x32xf32>
    %224 = vector.shape_cast %223 : vector<1x1x32xf32> to vector<1x32xf32>
    %225 = vector.broadcast %224 : vector<1x32xf32> to vector<8x32xf32>
    %226 = arith.addf %222, %225 : vector<8x32xf32>
    %c0_94 = arith.constant 0 : index
    %c0_95 = arith.constant 0 : index
    %227 = vector.load %arg1[%c0_94, %c0_95] : memref<8x32xf32, #tpu.memory_space<vmem>>, vector<8x32xf32>
    %c0_96 = arith.constant 0 : index
    %c0_97 = arith.constant 0 : index
    %228 = vector.load %arg3[%c0_96, %c0_97] : memref<8x32xf32, #tpu.memory_space<vmem>>, vector<8x32xf32>
    %229 = arith.addf %227, %228 : vector<8x32xf32>
    %c0_98 = arith.constant 0 : index
    %c0_99 = arith.constant 0 : index
    %230 = vector.load %arg12[%c0_98, %c0_99] : memref<32x32xf32, #tpu.memory_space<vmem>>, vector<32x32xf32>
    %cst_100 = arith.constant dense<0.000000e+00> : vector<8x32xf32>
    %231 = tpu.matmul %229, %230, %cst_100 {dimension_numbers = #tpu.dot_dimension_numbers<[1], [0], [0], [1], [0, 0, 1, 1], [], []>} : vector<8x32xf32>, vector<32x32xf32>, vector<8x32xf32> -> vector<8x32xf32>
    %c0_101 = arith.constant 0 : index
    %c0_102 = arith.constant 0 : index
    %232 = vector.load %arg13[%c0_101, %c0_102] : memref<1x32xf32, #tpu.memory_space<vmem>>, vector<1x32xf32>
    %233 = vector.broadcast %232 : vector<1x32xf32> to vector<8x32xf32>
    %234 = arith.addf %231, %233 : vector<8x32xf32>
    %c0_103 = arith.constant 0 : index
    %c0_104 = arith.constant 0 : index
    %235 = vector.load %arg14[%c0_103, %c0_104] : memref<32x64xf32, #tpu.memory_space<vmem>>, vector<32x64xf32>
    %cst_105 = arith.constant dense<0.000000e+00> : vector<8x64xf32>
    %236 = tpu.matmul %226, %235, %cst_105 {dimension_numbers = #tpu.dot_dimension_numbers<[1], [0], [0], [1], [0, 0, 1, 1], [], []>} : vector<8x32xf32>, vector<32x64xf32>, vector<8x64xf32> -> vector<8x64xf32>
    %c0_106 = arith.constant 0 : index
    %c0_107 = arith.constant 0 : index
    %237 = vector.load %arg15[%c0_106, %c0_107] : memref<1x64xf32, #tpu.memory_space<vmem>>, vector<1x64xf32>
    %238 = vector.broadcast %237 : vector<1x64xf32> to vector<8x64xf32>
    %239 = arith.addf %236, %238 : vector<8x64xf32>
    %240 = vector.extract_strided_slice %239 {offsets = [0, 0], sizes = [8, 32], strides = [1, 1]} : vector<8x64xf32> to vector<8x32xf32>
    %241 = vector.extract_strided_slice %239 {offsets = [0, 32], sizes = [8, 32], strides = [1, 1]} : vector<8x64xf32> to vector<8x32xf32>
    %242 = vector.extract_strided_slice %234 {offsets = [0, 0], sizes = [8, 8], strides = [1, 1]} : vector<8x32xf32> to vector<8x8xf32>
    %243 = vector.extract_strided_slice %240 {offsets = [0, 0], sizes = [8, 8], strides = [1, 1]} : vector<8x32xf32> to vector<8x8xf32>
    %244 = vector.extract_strided_slice %241 {offsets = [0, 0], sizes = [8, 8], strides = [1, 1]} : vector<8x32xf32> to vector<8x8xf32>
    %245 = tpu.transpose %243, [1, 0] : vector<8x8xf32> -> vector<8x8xf32>
    %cst_108 = arith.constant dense<0.000000e+00> : vector<8x8xf32>
    %246 = tpu.matmul %242, %245, %cst_108 {dimension_numbers = #tpu.dot_dimension_numbers<[1], [0], [0], [1], [0, 0, 1, 1], [], []>} : vector<8x8xf32>, vector<8x8xf32>, vector<8x8xf32> -> vector<8x8xf32>
    %cst_109 = arith.constant 0.353553385 : f32
    %247 = vector.broadcast %cst_109 : f32 to vector<8x8xf32>
    %248 = arith.mulf %246, %247 : vector<8x8xf32>
    %249 = arith.addf %248, %17 : vector<8x8xf32>
    %cst_110 = arith.constant dense<0xFF800000> : vector<8xf32>
    %250 = vector.multi_reduction <maximumf>, %249, %cst_110 [1] : vector<8x8xf32> to vector<8xf32>
    %251 = vector.shape_cast %250 : vector<8xf32> to vector<8x1xf32>
    %252 = vector.broadcast %251 : vector<8x1xf32> to vector<8x8xf32>
    %253 = arith.subf %249, %252 : vector<8x8xf32>
    %254 = math.exp %253 : vector<8x8xf32>
    %cst_111 = arith.constant dense<0.000000e+00> : vector<8xf32>
    %255 = vector.multi_reduction <add>, %254, %cst_111 [1] : vector<8x8xf32> to vector<8xf32>
    %256 = vector.shape_cast %255 : vector<8xf32> to vector<8x1xf32>
    %257 = tpu.reciprocal %256 {approx = true} : vector<8x1xf32> -> vector<8x1xf32>
    %258 = vector.broadcast %257 : vector<8x1xf32> to vector<8x8xf32>
    %259 = arith.mulf %254, %258 : vector<8x8xf32>
    %cst_112 = arith.constant dense<0.000000e+00> : vector<8x8xf32>
    %260 = tpu.matmul %259, %244, %cst_112 {dimension_numbers = #tpu.dot_dimension_numbers<[1], [0], [0], [1], [0, 0, 1, 1], [], []>} : vector<8x8xf32>, vector<8x8xf32>, vector<8x8xf32> -> vector<8x8xf32>
    %261 = vector.extract_strided_slice %234 {offsets = [0, 8], sizes = [8, 8], strides = [1, 1]} : vector<8x32xf32> to vector<8x8xf32>
    %262 = vector.extract_strided_slice %240 {offsets = [0, 8], sizes = [8, 8], strides = [1, 1]} : vector<8x32xf32> to vector<8x8xf32>
    %263 = vector.extract_strided_slice %241 {offsets = [0, 8], sizes = [8, 8], strides = [1, 1]} : vector<8x32xf32> to vector<8x8xf32>
    %264 = tpu.transpose %262, [1, 0] : vector<8x8xf32> -> vector<8x8xf32>
    %cst_113 = arith.constant dense<0.000000e+00> : vector<8x8xf32>
    %265 = tpu.matmul %261, %264, %cst_113 {dimension_numbers = #tpu.dot_dimension_numbers<[1], [0], [0], [1], [0, 0, 1, 1], [], []>} : vector<8x8xf32>, vector<8x8xf32>, vector<8x8xf32> -> vector<8x8xf32>
    %cst_114 = arith.constant 0.353553385 : f32
    %266 = vector.broadcast %cst_114 : f32 to vector<8x8xf32>
    %267 = arith.mulf %265, %266 : vector<8x8xf32>
    %268 = arith.addf %267, %17 : vector<8x8xf32>
    %cst_115 = arith.constant dense<0xFF800000> : vector<8xf32>
    %269 = vector.multi_reduction <maximumf>, %268, %cst_115 [1] : vector<8x8xf32> to vector<8xf32>
    %270 = vector.shape_cast %269 : vector<8xf32> to vector<8x1xf32>
    %271 = vector.broadcast %270 : vector<8x1xf32> to vector<8x8xf32>
    %272 = arith.subf %268, %271 : vector<8x8xf32>
    %273 = math.exp %272 : vector<8x8xf32>
    %cst_116 = arith.constant dense<0.000000e+00> : vector<8xf32>
    %274 = vector.multi_reduction <add>, %273, %cst_116 [1] : vector<8x8xf32> to vector<8xf32>
    %275 = vector.shape_cast %274 : vector<8xf32> to vector<8x1xf32>
    %276 = tpu.reciprocal %275 {approx = true} : vector<8x1xf32> -> vector<8x1xf32>
    %277 = vector.broadcast %276 : vector<8x1xf32> to vector<8x8xf32>
    %278 = arith.mulf %273, %277 : vector<8x8xf32>
    %cst_117 = arith.constant dense<0.000000e+00> : vector<8x8xf32>
    %279 = tpu.matmul %278, %263, %cst_117 {dimension_numbers = #tpu.dot_dimension_numbers<[1], [0], [0], [1], [0, 0, 1, 1], [], []>} : vector<8x8xf32>, vector<8x8xf32>, vector<8x8xf32> -> vector<8x8xf32>
    %280 = vector.extract_strided_slice %234 {offsets = [0, 16], sizes = [8, 8], strides = [1, 1]} : vector<8x32xf32> to vector<8x8xf32>
    %281 = vector.extract_strided_slice %240 {offsets = [0, 16], sizes = [8, 8], strides = [1, 1]} : vector<8x32xf32> to vector<8x8xf32>
    %282 = vector.extract_strided_slice %241 {offsets = [0, 16], sizes = [8, 8], strides = [1, 1]} : vector<8x32xf32> to vector<8x8xf32>
    %283 = tpu.transpose %281, [1, 0] : vector<8x8xf32> -> vector<8x8xf32>
    %cst_118 = arith.constant dense<0.000000e+00> : vector<8x8xf32>
    %284 = tpu.matmul %280, %283, %cst_118 {dimension_numbers = #tpu.dot_dimension_numbers<[1], [0], [0], [1], [0, 0, 1, 1], [], []>} : vector<8x8xf32>, vector<8x8xf32>, vector<8x8xf32> -> vector<8x8xf32>
    %cst_119 = arith.constant 0.353553385 : f32
    %285 = vector.broadcast %cst_119 : f32 to vector<8x8xf32>
    %286 = arith.mulf %284, %285 : vector<8x8xf32>
    %287 = arith.addf %286, %17 : vector<8x8xf32>
    %cst_120 = arith.constant dense<0xFF800000> : vector<8xf32>
    %288 = vector.multi_reduction <maximumf>, %287, %cst_120 [1] : vector<8x8xf32> to vector<8xf32>
    %289 = vector.shape_cast %288 : vector<8xf32> to vector<8x1xf32>
    %290 = vector.broadcast %289 : vector<8x1xf32> to vector<8x8xf32>
    %291 = arith.subf %287, %290 : vector<8x8xf32>
    %292 = math.exp %291 : vector<8x8xf32>
    %cst_121 = arith.constant dense<0.000000e+00> : vector<8xf32>
    %293 = vector.multi_reduction <add>, %292, %cst_121 [1] : vector<8x8xf32> to vector<8xf32>
    %294 = vector.shape_cast %293 : vector<8xf32> to vector<8x1xf32>
    %295 = tpu.reciprocal %294 {approx = true} : vector<8x1xf32> -> vector<8x1xf32>
    %296 = vector.broadcast %295 : vector<8x1xf32> to vector<8x8xf32>
    %297 = arith.mulf %292, %296 : vector<8x8xf32>
    %cst_122 = arith.constant dense<0.000000e+00> : vector<8x8xf32>
    %298 = tpu.matmul %297, %282, %cst_122 {dimension_numbers = #tpu.dot_dimension_numbers<[1], [0], [0], [1], [0, 0, 1, 1], [], []>} : vector<8x8xf32>, vector<8x8xf32>, vector<8x8xf32> -> vector<8x8xf32>
    %299 = vector.extract_strided_slice %234 {offsets = [0, 24], sizes = [8, 8], strides = [1, 1]} : vector<8x32xf32> to vector<8x8xf32>
    %300 = vector.extract_strided_slice %240 {offsets = [0, 24], sizes = [8, 8], strides = [1, 1]} : vector<8x32xf32> to vector<8x8xf32>
    %301 = vector.extract_strided_slice %241 {offsets = [0, 24], sizes = [8, 8], strides = [1, 1]} : vector<8x32xf32> to vector<8x8xf32>
    %302 = tpu.transpose %300, [1, 0] : vector<8x8xf32> -> vector<8x8xf32>
    %cst_123 = arith.constant dense<0.000000e+00> : vector<8x8xf32>
    %303 = tpu.matmul %299, %302, %cst_123 {dimension_numbers = #tpu.dot_dimension_numbers<[1], [0], [0], [1], [0, 0, 1, 1], [], []>} : vector<8x8xf32>, vector<8x8xf32>, vector<8x8xf32> -> vector<8x8xf32>
    %cst_124 = arith.constant 0.353553385 : f32
    %304 = vector.broadcast %cst_124 : f32 to vector<8x8xf32>
    %305 = arith.mulf %303, %304 : vector<8x8xf32>
    %306 = arith.addf %305, %17 : vector<8x8xf32>
    %cst_125 = arith.constant dense<0xFF800000> : vector<8xf32>
    %307 = vector.multi_reduction <maximumf>, %306, %cst_125 [1] : vector<8x8xf32> to vector<8xf32>
    %308 = vector.shape_cast %307 : vector<8xf32> to vector<8x1xf32>
    %309 = vector.broadcast %308 : vector<8x1xf32> to vector<8x8xf32>
    %310 = arith.subf %306, %309 : vector<8x8xf32>
    %311 = math.exp %310 : vector<8x8xf32>
    %cst_126 = arith.constant dense<0.000000e+00> : vector<8xf32>
    %312 = vector.multi_reduction <add>, %311, %cst_126 [1] : vector<8x8xf32> to vector<8xf32>
    %313 = vector.shape_cast %312 : vector<8xf32> to vector<8x1xf32>
    %314 = tpu.reciprocal %313 {approx = true} : vector<8x1xf32> -> vector<8x1xf32>
    %315 = vector.broadcast %314 : vector<8x1xf32> to vector<8x8xf32>
    %316 = arith.mulf %311, %315 : vector<8x8xf32>
    %cst_127 = arith.constant dense<0.000000e+00> : vector<8x8xf32>
    %317 = tpu.matmul %316, %301, %cst_127 {dimension_numbers = #tpu.dot_dimension_numbers<[1], [0], [0], [1], [0, 0, 1, 1], [], []>} : vector<8x8xf32>, vector<8x8xf32>, vector<8x8xf32> -> vector<8x8xf32>
    %318 = tpu.concatenate %260, %279, %298, %317 in 1 : vector<8x8xf32>, vector<8x8xf32>, vector<8x8xf32>, vector<8x8xf32> -> vector<8x32xf32>
    %c0_128 = arith.constant 0 : index
    %c0_129 = arith.constant 0 : index
    %319 = vector.load %arg16[%c0_128, %c0_129] : memref<32x32xf32, #tpu.memory_space<vmem>>, vector<32x32xf32>
    %cst_130 = arith.constant dense<0.000000e+00> : vector<8x32xf32>
    %320 = tpu.matmul %318, %319, %cst_130 {dimension_numbers = #tpu.dot_dimension_numbers<[1], [0], [0], [1], [0, 0, 1, 1], [], []>} : vector<8x32xf32>, vector<32x32xf32>, vector<8x32xf32> -> vector<8x32xf32>
    %c0_131 = arith.constant 0 : index
    %c0_132 = arith.constant 0 : index
    %321 = vector.load %arg17[%c0_131, %c0_132] : memref<1x32xf32, #tpu.memory_space<vmem>>, vector<1x32xf32>
    %322 = vector.broadcast %321 : vector<1x32xf32> to vector<8x32xf32>
    %323 = arith.addf %320, %322 : vector<8x32xf32>
    %c0_133 = arith.constant 0 : index
    %c0_134 = arith.constant 0 : index
    %324 = vector.load %arg18[%c0_133, %c0_134] : memref<32x64xf32, #tpu.memory_space<vmem>>, vector<32x64xf32>
    %cst_135 = arith.constant dense<0.000000e+00> : vector<8x64xf32>
    %325 = tpu.matmul %323, %324, %cst_135 {dimension_numbers = #tpu.dot_dimension_numbers<[1], [0], [0], [1], [0, 0, 1, 1], [], []>} : vector<8x32xf32>, vector<32x64xf32>, vector<8x64xf32> -> vector<8x64xf32>
    %c0_136 = arith.constant 0 : index
    %c0_137 = arith.constant 0 : index
    %326 = vector.load %arg19[%c0_136, %c0_137] : memref<1x64xf32, #tpu.memory_space<vmem>>, vector<1x64xf32>
    %327 = vector.broadcast %326 : vector<1x64xf32> to vector<8x64xf32>
    %328 = arith.addf %325, %327 : vector<8x64xf32>
    %cst_138 = arith.constant 0.000000e+00 : f32
    %329 = vector.broadcast %cst_138 : f32 to vector<8x64xf32>
    %330 = arith.maximumf %328, %329 : vector<8x64xf32>
    %c0_139 = arith.constant 0 : index
    %c0_140 = arith.constant 0 : index
    %331 = vector.load %arg20[%c0_139, %c0_140] : memref<64x32xf32, #tpu.memory_space<vmem>>, vector<64x32xf32>
    %cst_141 = arith.constant dense<0.000000e+00> : vector<8x32xf32>
    %332 = tpu.matmul %330, %331, %cst_141 {dimension_numbers = #tpu.dot_dimension_numbers<[1], [0], [0], [1], [0, 0, 1, 1], [], []>} : vector<8x64xf32>, vector<64x32xf32>, vector<8x32xf32> -> vector<8x32xf32>
    %c0_142 = arith.constant 0 : index
    %c0_143 = arith.constant 0 : index
    %333 = vector.load %arg21[%c0_142, %c0_143] : memref<1x32xf32, #tpu.memory_space<vmem>>, vector<1x32xf32>
    %334 = vector.broadcast %333 : vector<1x32xf32> to vector<8x32xf32>
    %335 = arith.addf %332, %334 : vector<8x32xf32>
    %c0_144 = arith.constant 0 : index
    %c0_145 = arith.constant 0 : index
    %336 = vector.load %arg22[%c0_144, %c0_145] : memref<8x32xf32, #tpu.memory_space<vmem>>, vector<8x32xf32>
    tpu.vector_store %arg22[%c0_144, %c0_145], %335 {strides = array<i32>} : memref<8x32xf32, #tpu.memory_space<vmem>>, vector<8x32xf32>,
    return
  }
}

</mosaic_0001>

<bundles_post_ra>
// kernel: transformer_forward.1
= control target key start
LH: loop header
LB: loop body
LE: loop exit
PB: predicated region body
PF: predicated region fallthrough
CT: control target
= control target key end

     0   :  { %s4498_s0 = inlined_call_operand.vmem [shape: f32[8,16], index: 0, kind: input, shape index: {}]   ;;  %s4499_s1 = inlined_call_operand.vmem [shape: f32[8,32], index: 1, kind: input, shape index: {}]   ;;  %s4500_s2 = inlined_call_operand.vmem [shape: f32[8,32], index: 2, kind: input, shape index: {}, may-alias: {2,3}]   ;;  %s4501_s3 = inlined_call_operand.vmem [shape: f32[8,32], index: 3, kind: input, shape index: {}, may-alias: {2,3}]   ;;  %s4502_s4 = inlined_call_operand.vmem [shape: f32[16,32], index: 4, kind: input, shape index: {}]   ;;  %s4503_s5 = inlined_call_operand.vmem [shape: f32[1,32], index: 5, kind: input, shape index: {}]   ;;  %s4504_s6 = inlined_call_operand.vmem [shape: f32[2,32,96], index: 6, kind: input, shape index: {}]   ;;  %s4505_s7 = inlined_call_operand.vmem [shape: f32[2,1,96], index: 7, kind: input, shape index: {}]   ;;  %s4506_s8 = inlined_call_operand.vmem [shape: f32[2,32,64], index: 8, kind: input, shape index: {}]   ;;  %s4507_s9 = inlined_call_operand.vmem [shape: f32[2,1,64], index: 9, kind: input, shape index: {}]   ;;  %s4508_s10 = inlined_call_operand.vmem [shape: f32[2,64,32], index: 10, kind: input, shape index: {}]   ;;  %s4509_s11 = inlined_call_operand.vmem [shape: f32[2,1,32], index: 11, kind: input, shape index: {}]   ;;  %s4510_s12 = inlined_call_operand.vmem [shape: f32[32,32], index: 12, kind: input, shape index: {}]   ;;  %s4511_s13 = inlined_call_operand.vmem [shape: f32[1,32], index: 13, kind: input, shape index: {}]   ;;  %s4512_s14 = inlined_call_operand.vmem [shape: f32[32,64], index: 14, kind: input, shape index: {}]   ;;  %s4513_s15 = inlined_call_operand.vmem [shape: f32[1,64], index: 15, kind: input, shape index: {}]   ;;  %s4514_s16 = inlined_call_operand.vmem [shape: f32[32,32], index: 16, kind: input, shape index: {}]   ;;  %s4515_s17 = inlined_call_operand.vmem [shape: f32[1,32], index: 17, kind: input, shape index: {}]   ;;  %s4516_s18 = inlined_call_operand.vmem [shape: f32[32,64], index: 18, kind: input, shape index: {}]   ;;  %s4517_s19 = inlined_call_operand.vmem [shape: f32[1,64], index: 19, kind: input, shape index: {}]   ;;  %s4518_s20 = inlined_call_operand.vmem [shape: f32[64,32], index: 20, kind: input, shape index: {}]   ;;  %s4519_s21 = inlined_call_operand.vmem [shape: f32[1,32], index: 21, kind: input, shape index: {}]   ;;  %s4520_s22 = inlined_call_operand.hbm [shape: f32[8,32], index: 22, kind: output, shape index: {}]  }
   0x1   :  { %4539 = sst [smem:[#allocation5_spill]] %s4498_s0 }
   0x2   :  { %4540 = sst [smem:[#allocation6_spill]] %s4499_s1 }
   0x3   :  { %4541 = sst [smem:[#allocation7_spill]] %s4500_s2 }
   0x4   :  { %4542 = sst [smem:[#allocation8_spill]] %s4501_s3 }
   0x5   :  { %4543 = sst [smem:[#allocation9_spill]] %s4502_s4 }
   0x6   :  { %4544 = sst [smem:[#allocation10_spill]] %s4503_s5 }
   0x7   :  { %4545 = sst [smem:[#allocation11_spill]] %s4504_s6 }
   0x8   :  { %s4546_s29 = sld [smem:[#allocation9_spill]]  ;;  %v3823_v2 = vmov 0.0|0.0   ;;  %vm3824_vm0 = vmmov 0   ;;  %v3825_v4 = vmov 0.0   ;;  %s4547_s1 = sld [smem:[#allocation11_spill]] }
   0x9   :  { %3646 = vmatprep.subr.bf16.mxu0 %v3823_v2  ;;  %3378 = vmatprep.mubr.msk.f32.mxu0 %vm3824_vm0, %v3825_v4 }
   0xa   :  { %3397 = vmatprep.subr.mxu1 %v3825_v4  ;;  %3399 = vmatprep.mubr.msk.f32.mxu1 %vm3824_vm0, %v3825_v4 }
   0xe   :  { %v73_v0 = vld [vmem:[%s4546_s29] sm:$0xff]  ;;  %v74_v1 = vld [vmem:[%s4546_s29 + $0x8] sm:$0xff] }
   0xf   :  { %v3647_v3 = vpack.c.bf16 %v74_v1, %v73_v0  ;;  %v164_v5 = vld [vmem:[%s4547_s1] sm:$0xff]  ;;  %v165_v6 = vld [vmem:[%s4547_s1 + $0x8] sm:$0xff] }
  0x10   :  { %27 = vsyncpa [#allocation3], 0  ;;  %s4548_s26 = sld [smem:[#allocation5_spill]]  ;;  %vm82_vm1 = vcmask 130048   ;;  %v3650_v8 = vpack.c.bf16 %v165_v6, %v164_v5  ;;  %v166_v9 = vld [vmem:[%s4547_s1 + $0x10] sm:$0xff]  ;;  %v167_v10 = vld [vmem:[%s4547_s1 + $0x18] sm:$0xff]  ;;  %v156_v24 = vlaneseq }
  0x11   :  { %3648 = vmatpush3.bf16.msra.mxu0 %v3647_v3  ;;  %v3653_v11 = vpack.c.bf16 %v167_v10, %v166_v9  ;;  %s4549_s4 = sld [smem:[#allocation10_spill]]  ;;  %s4550_s5 = sld [smem:[#allocation7_spill]]  ;;  %vm175_vm2 = vcmask 261120   ;;  %v3179_v18 = vld [vmem:[%s4505_s7] ss:$0 sm:$0xff]  ;;  %vm252_vm3 = vcmask 64512  }
  0x12   :  { %3649 = vmatprep.subr.bf16.mxu0 %v3823_v2  ;;  %s4525_s25 = smov 64   ;;  %s4535_s2 = smov 88   ;;  %v157_v25 = vshrl.u32 %v156_v24, 7  ;;  %v159_v26 = vand.u32 127, %v156_v24  ;;  %vm931_vm5 = vcmask 195584   ;;  %vm1033_vm6 = vcmask 523264  }
  0x13   :  { %s3829_s27 = smov 120   ;;  %s4537_s3 = smov 80  }
  0x14   :  { %vm160_vm4 = vcmp.gt.s32.totalorder %v159_v26, %v157_v25  ;;  %s4531_s28 = smov 72   ;;  %s4529_s29 = smov 112  }
  0x15   :  { %v4024_v28 = vsel %vm160_vm4, -1e+09, %v3825_v4  ;;  %s4527_s30 = smov 104   ;;  %s4523_s0 = smov 40  }
  0x16   :  { %v72_v7 = vld [vmem:[%s4548_s26] sm:$0xff]  ;;  %s3827_s26 = smov 96   ;;  %s4524_s23 = smov 48  }
  0x17   :  { %3379 = vmatmul.mubr.msk.f32.vlgmr.msra.gmra.mrb[0].mxu0 %vm82_vm1, %v72_v7  ;;  %v3177_v12 = vld [vmem:[%s4549_s4] ss:$0 sm:$0xff]  ;;  %s4526_s4 = smov 56   ;;  %s4538_s24 = smov 16  }
  0x18   :  { %3651 = vmatpush3.bf16.msra.mxu0 %v3650_v8  ;;  %3389 = vmatprep.mubr.msk.f32.mxu0 %vm3824_vm0, %v3825_v4  ;;  %v3995_v14 = vld [vmem:[%s4550_s5] sm:$0xff]  ;;  %s4556_s5 = smov 48   ;;  %s4563_s6 = smov 8  }
  0x19   :  { %3652 = vmatprep.subr.bf16.mxu0 %v3823_v2 }
  0x1c   :  { %3654 = vmatpush3.bf16.msra.mxu0 %v3653_v11 }
  0x1d   :  { %3392 = vmatprep.subr.mxu0 %v3825_v4 }
  0xea   :  { %v152_v13 = vpop.f32.mrb[0].mxu0 }
  0xeb   :  { %v153_v15 = vadd.f32 %v3177_v12, %v152_v13  ;;  %v3380_v16 = vpop.f32.mrb[1].mxu0 }
  0xed   :  { %v163_v17 = vadd.f32 %v3995_v14, %v153_v15 }
  0xef   :  { %3390 = vmatmul.mubr.msk.f32.vlgmr.msra.gmra.mrb[2].mxu0 %vm175_vm2, %v163_v17 }
  0xf0   :  { %3394 = vmatprep.mubr.msk.f32.mxu0 %vm3824_vm0, %v3825_v4 }
 0x1c2   :  { %v245_v19 = vpop.f32.mrb[2].mxu0 }
 0x1c3   :  { %v4004_v20 = vadd.f32 %v3179_v18, %v245_v19  ;;  %v3391_v21 = vpop.f32.mrb[3].mxu0 }
 0x1c5   :  { %340 = vrot.lane.b32.xlu1 %v4004_v20, %s4525_s25  ;;  %250 = vrot.lane.b32.xlu0 %v4004_v20, %s3827_s26  ;;  %s4551_s25 = smov 72  }
 0x1c9   :  { %418 = vrot.lane.b32.xlu1 %v4004_v20, %s4535_s2 }
 0x1cd   :  { %416 = vrot.lane.b32.xlu1 %v4004_v20, %s3829_s27 }
 0x1d1   :  { %585 = vrot.lane.b32.xlu1 %v4004_v20, %s4537_s3 }
 0x237   :  { %v341_v22 = vpop.permute.xlu1 %340  ;;  %v251_v23 = vpop.permute.xlu0 %250 }
 0x238   :  { %3393 = vmatpush3.xpose.msk.msra.mxu0 %vm252_vm3, %v251_v23  ;;  %3398 = vmatpush3.msra.mxu1 %v341_v22 }
 0x239   :  { %3402 = vmatprep.subr.mxu1 %v3825_v4  ;;  %3407 = vmatprep.subr.mxu0 %v3825_v4 }
 0x23b   :  { %3395 = vmatmul.mubr.msk.f32.vlgmr.msra.gmra.mrb[4].mxu0 %vm252_vm3, %v4004_v20  ;;  %v419_v38 = vpop.permute.xlu1 %418 }
 0x23c   :  { %3409 = vmatprep.mubr.msk.f32.mxu0 %vm3824_vm0, %v3825_v4 }
 0x23f   :  { %v417_v39 = vpop.permute.xlu1 %416 }
 0x243   :  { %v586_v40 = vpop.permute.xlu1 %585 }
 0x30e   :  { %v323_v27 = vpop.f32.mrb[4].mxu0 }
 0x30f   :  { %v327_v29 = vmul.f32 0.35355338, %v323_v27  ;;  %v3396_v30 = vpop.f32.mrb[5].mxu0 }
 0x311   :  { %v328_v31 = vadd.f32 %v327_v29, %v4024_v28 }
 0x313   :  { %v329_v32 = vsel %vm252_vm3, %v328_v31, -inf }
 0x314   :  { %330 = vmax.xlane.f32.xlu0 %v329_v32  ;;  %v934_v32 = vld [vmem:[%s4506_s8 + $0x8] sm:$0xff] }
 0x32a   :  { %752 = vrot.lane.b32.xlu0 %v4004_v20, %s4531_s28  ;;  %s4557_s28 = smov 40  }
 0x3a1   :  { %v331_v33 = vpop.xlane.xlu0 %330 }
 0x3a2   :  { %v332_v34 = vsub.f32 %v328_v31, %v331_v33  ;;  %v933_v31 = vld [vmem:[%s4506_s8] sm:$0xff] }
 0x3a3   :  { %v3656_v33 = vpack.c.bf16 %v934_v32, %v933_v31 }
 0x3a4   :  { %v333_v35 = vmul.f32 1.442695, %v332_v34  ;;  %v935_v34 = vld [vmem:[%s4506_s8 + $0x10] sm:$0xff] }
 0x3a5   :  { %v753_v45 = vpop.permute.xlu0 %752 }
 0x3a6   :  { %3751 = vpow2.f32 %v333_v35  ;;  %v936_v35 = vld [vmem:[%s4506_s8 + $0x18] sm:$0xff] }
 0x3b0   :  { %v3752_v36 = vpop.eup %3751 }
 0x3b1   :  { %v335_v37 = vsel %vm252_vm3, %v3752_v36, 0.0 }
 0x3b2   :  { %336 = vadd.xlane.f32.xlu1 %v335_v37  ;;  %v1018_v37 = vld [vmem:[%s4508_s10] sm:$0xff] }
 0x3c3   :  { %583 = vrot.lane.b32.xlu1 %v4004_v20, %s4529_s29 }
 0x3c7   :  { %750 = vrot.lane.b32.xlu1 %v4004_v20, %s4527_s30  ;;  %s4554_s30 = smov 56  }
 0x43f   :  { %v337_v41 = vpop.xlane.xlu1 %336 }
 0x440   :  { %3753 = vrcp.f32 %v337_v41  ;;  %v1021_v41 = vld [vmem:[%s4508_s10 + $0x18] sm:$0xff] }
 0x443   :  { %v584_v44 = vpop.permute.xlu1 %583 }
 0x447   :  { %v751_v46 = vpop.permute.xlu1 %750 }
 0x44a   :  { %v3754_v42 = vpop.eup %3753 }
 0x44b   :  { %v339_v43 = vmul.f32 %v3754_v42, %v3752_v36  ;;  %v3659_v36 = vpack.c.bf16 %v936_v35, %v935_v34 }
 0x44d   :  { %3400 = vmatmul.mubr.msk.f32.vlgmr.msra.gmra.mrb[0].mxu1 %vm252_vm3, %v339_v43 }
 0x44e   :  { %3403 = vmatpush3.xpose.msk.msra.mxu1 %vm252_vm3, %v419_v38  ;;  %3404 = vmatprep.mubr.msk.f32.mxu1 %vm3824_vm0, %v3825_v4  ;;  %v1019_v38 = vld [vmem:[%s4508_s10 + $0x8] sm:$0xff] }
 0x44f   :  { %3412 = vmatprep.subr.mxu1 %v3825_v4 }
 0x451   :  { %3405 = vmatmul.mubr.msk.f32.vlgmr.msra.gmra.mrb[2].mxu1 %vm252_vm3, %v417_v39  ;;  %v1020_v39 = vld [vmem:[%s4508_s10 + $0x10] sm:$0xff] }
 0x452   :  { %3413 = vmatpush3.xpose.msk.msra.mxu1 %vm252_vm3, %v586_v40  ;;  %3414 = vmatprep.mubr.msk.f32.mxu1 %vm3824_vm0, %v3825_v4  ;;  %v3662_v40 = vpack.c.bf16 %v1019_v38, %v1018_v37  ;;  %v3665_v43 = vpack.c.bf16 %v1021_v41, %v1020_v39 }
 0x453   :  { %3422 = vmatprep.subr.mxu1 %v3825_v4 }
 0x455   :  { %3415 = vmatmul.mubr.msk.f32.vlgmr.msra.gmra.mrb[4].mxu1 %vm252_vm3, %v584_v44 }
 0x456   :  { %3423 = vmatpush3.xpose.msk.msra.mxu1 %vm252_vm3, %v753_v45  ;;  %3424 = vmatprep.mubr.msk.f32.mxu1 %vm3824_vm0, %v3825_v4  ;;  %v1022_v45 = vld [vmem:[%s4508_s10 + $0x20] sm:$0xff] }
 0x457   :  { %3655 = vmatprep.subr.bf16.mxu1 %v3823_v2 }
 0x459   :  { %3425 = vmatmul.mubr.msk.f32.vlgmr.msra.gmra.mrb[6].mxu1 %vm252_vm3, %v751_v46  ;;  %v1023_v46 = vld [vmem:[%s4508_s10 + $0x28] sm:$0xff] }
 0x45a   :  { %3440 = vmatprep.mubr.msk.f32.mxu1 %vm3824_vm0, %v3825_v4  ;;  %3657 = vmatpush3.bf16.msra.mxu1 %v3656_v33 }
 0x45b   :  { %3658 = vmatprep.subr.bf16.mxu1 %v3823_v2 }
 0x45e   :  { %3660 = vmatpush3.bf16.msra.mxu1 %v3659_v36 }
 0x45f   :  { %3673 = vmatprep.subr.bf16.mxu1 %v3823_v2 }
 0x520   :  { %v4053_v47 = vpop.f32.mrb[0].mxu1 }
 0x521   :  { %v3401_v48 = vpop.f32.mrb[1].mxu1 }
 0x524   :  { %v490_v49 = vpop.f32.mrb[2].mxu1 }
 0x525   :  { %v494_v50 = vmul.f32 0.35355338, %v490_v49  ;;  %v3406_v51 = vpop.f32.mrb[3].mxu1  ;;  %v3668_v49 = vpack.c.bf16 %v1023_v46, %v1022_v45 }
 0x527   :  { %v495_v52 = vadd.f32 %v494_v50, %v4024_v28 }
 0x528   :  { %v657_v53 = vpop.f32.mrb[4].mxu1 }
 0x529   :  { %v661_v54 = vmul.f32 0.35355338, %v657_v53  ;;  %v3416_v55 = vpop.f32.mrb[5].mxu1  ;;  %v496_v56 = vsel %vm252_vm3, %v495_v52, -inf }
 0x52a   :  { %497 = vmax.xlane.f32.xlu1 %v496_v56 }
 0x52b   :  { %v662_v57 = vadd.f32 %v661_v54, %v4024_v28 }
 0x52c   :  { %v824_v58 = vpop.f32.mrb[6].mxu1 }
 0x52d   :  { %v828_v59 = vmul.f32 0.35355338, %v824_v58  ;;  %v3426_v60 = vpop.f32.mrb[7].mxu1  ;;  %v663_v61 = vsel %vm252_vm3, %v662_v57, -inf }
 0x52e   :  { %664 = vmax.xlane.f32.xlu0 %v663_v61  ;;  %v1025_v60 = vld [vmem:[%s4508_s10 + $0x38] sm:$0xff] }
 0x52f   :  { %v829_v62 = vadd.f32 %v828_v59, %v4024_v28  ;;  %v1024_v59 = vld [vmem:[%s4508_s10 + $0x30] sm:$0xff] }
 0x530   :  { %v3671_v61 = vpack.c.bf16 %v1025_v60, %v1024_v59 }
 0x531   :  { %v830_v63 = vsel %vm252_vm3, %v829_v62, -inf }
 0x532   :  { %831 = vmax.xlane.f32.xlu1 %v830_v63 }
 0x543   :  { %507 = vrot.lane.b32.xlu1 %v4004_v20, %s4526_s4  ;;  %s4536_s4 = smov 8  }
 0x5b7   :  { %v498_v0 = vpop.xlane.xlu1 %497 }
 0x5b8   :  { %v499_v1 = vsub.f32 %v495_v52, %v498_v0  ;;  %v3193_v0 = vld [vmem:[%s4507_s9] ss:$0 sm:$0xff] }
 0x5ba   :  { %v500_v3 = vmul.f32 1.442695, %v499_v1 }
 0x5bb   :  { %v665_v5 = vpop.xlane.xlu0 %664 }
 0x5bc   :  { %3755 = vpow2.f32 %v500_v3  ;;  %v666_v6 = vsub.f32 %v662_v57, %v665_v5 }
 0x5be   :  { %v667_v7 = vmul.f32 1.442695, %v666_v6 }
 0x5bf   :  { %v832_v8 = vpop.xlane.xlu1 %831 }
 0x5c0   :  { %3757 = vpow2.f32 %v667_v7  ;;  %v833_v9 = vsub.f32 %v829_v62, %v832_v8  ;;  %v3198_v62 = vld [vmem:[%s4547_s1 + $0x28] sm:$0xff]  ;;  %v3199_v7 = vld [vmem:[%s4547_s1 + $0x30] sm:$0xff]  ;;  %v3200_v8 = vld [vmem:[%s4547_s1 + $0x38] sm:$0xff] }
 0x5c2   :  { %v834_v10 = vmul.f32 1.442695, %v833_v9  ;;  %v3677_v9 = vpack.c.bf16 %v3200_v8, %v3199_v7 }
 0x5c3   :  { %v508_v11 = vpop.permute.xlu1 %507 }
 0x5c4   :  { %3759 = vpow2.f32 %v834_v10  ;;  %3408 = vmatpush3.msra.mxu0 %v508_v11  ;;  %v3195_v10 = vld [vmem:[%s4509_s11] ss:$0 sm:$0xff] }
 0x5c5   :  { %3417 = vmatprep.subr.mxu0 %v3825_v4 }
 0x5c6   :  { %v3756_v12 = vpop.eup %3755 }
 0x5c7   :  { %v502_v13 = vsel %vm252_vm3, %v3756_v12, 0.0 }
 0x5c8   :  { %503 = vadd.xlane.f32.xlu1 %v502_v13 }
 0x5ca   :  { %v3758_v15 = vpop.eup %3757 }
 0x5cb   :  { %v669_v16 = vsel %vm252_vm3, %v3758_v15, 0.0 }
 0x5cc   :  { %670 = vadd.xlane.f32.xlu1 %v669_v16  ;;  %v3202_v16 = vld [vmem:[%s4505_s7 + $0x1] ss:$0 sm:$0xff]  ;;  %s4552_s7 = smov 112  }
 0x5ce   :  { %v3760_v17 = vpop.eup %3759 }
 0x5cf   :  { %v836_v18 = vsel %vm252_vm3, %v3760_v17, 0.0 }
 0x5d0   :  { %837 = vadd.xlane.f32.xlu0 %v836_v18 }
 0x5dd   :  { %841 = vrot.lane.b32.xlu1 %v4004_v20, %s4523_s0  ;;  %s4533_s0 = smov 24  }
 0x5e6   :  { %674 = vrot.lane.b32.xlu0 %v4004_v20, %s4524_s23  ;;  %s4555_s23 = smov 64  }
 0x655   :  { %v504_v19 = vpop.xlane.xlu1 %503 }
 0x656   :  { %3761 = vrcp.f32 %v504_v19 }
 0x659   :  { %v671_v21 = vpop.xlane.xlu1 %670 }
 0x65a   :  { %3763 = vrcp.f32 %v671_v21 }
 0x65d   :  { %v838_v22 = vpop.xlane.xlu0 %837  ;;  %v842_v20 = vpop.permute.xlu1 %841 }
 0x65e   :  { %3765 = vrcp.f32 %v838_v22 }
 0x660   :  { %v3762_v23 = vpop.eup %3761 }
 0x661   :  { %v506_v24 = vmul.f32 %v3762_v23, %v3756_v12  ;;  %v675_v25 = vpop.permute.xlu0 %674 }
 0x663   :  { %3410 = vmatmul.mubr.msk.f32.vlgmr.msra.gmra.mrb[6].mxu0 %vm252_vm3, %v506_v24 }
 0x664   :  { %v3764_v26 = vpop.eup %3763  ;;  %3418 = vmatpush3.msra.mxu0 %v675_v25  ;;  %3419 = vmatprep.mubr.msk.f32.mxu0 %vm3824_vm0, %v3825_v4 }
 0x665   :  { %v673_v27 = vmul.f32 %v3764_v26, %v3758_v15  ;;  %3427 = vmatprep.subr.mxu0 %v3825_v4 }
 0x667   :  { %3420 = vmatmul.mubr.msk.f32.vlgmr.msra.gmra.mrb[8].mxu0 %vm252_vm3, %v673_v27 }
 0x668   :  { %v3766_v29 = vpop.eup %3765  ;;  %3428 = vmatpush3.msra.mxu0 %v842_v20  ;;  %3429 = vmatprep.mubr.msk.f32.mxu0 %vm3824_vm0, %v3825_v4 }
 0x669   :  { %v840_v30 = vmul.f32 %v3766_v29, %v3760_v17  ;;  %3661 = vmatprep.subr.bf16.mxu0 %v3823_v2 }
 0x66b   :  { %3430 = vmatmul.mubr.msk.f32.vlgmr.msra.gmra.mrb[10].mxu0 %vm252_vm3, %v840_v30 }
 0x66c   :  { %3459 = vmatprep.mubr.msk.f32.mxu0 %vm3824_vm0, %v3825_v4  ;;  %3663 = vmatpush3.bf16.msra.mxu0 %v3662_v40 }
 0x66d   :  { %3664 = vmatprep.subr.bf16.mxu0 %v3823_v2 }
 0x670   :  { %3666 = vmatpush3.bf16.msra.mxu0 %v3665_v43 }
 0x671   :  { %3667 = vmatprep.subr.bf16.mxu0 %v3823_v2 }
 0x674   :  { %3669 = vmatpush3.bf16.msra.mxu0 %v3668_v49 }
 0x675   :  { %3670 = vmatprep.subr.bf16.mxu0 %v3823_v2 }
 0x678   :  { %3672 = vmatpush3.bf16.msra.mxu0 %v3671_v61 }
 0x679   :  { %3478 = vmatprep.subr.mxu0 %v3825_v4 }
 0x736   :  { %v579_v42 = vpop.f32.mrb[6].mxu0 }
 0x737   :  { %918 = vrot.lane.b32.xlu1 %v579_v42, %s4536_s4  ;;  %v3411_v44 = vpop.f32.mrb[7].mxu0 }
 0x73a   :  { %v746_v48 = vpop.f32.mrb[8].mxu0 }
 0x73b   :  { %922 = vrot.lane.b32.xlu0 %v746_v48, %s4538_s24  ;;  %v3421_v50 = vpop.f32.mrb[9].mxu0 }
 0x73e   :  { %v913_v51 = vpop.f32.mrb[10].mxu0 }
 0x73f   :  { %926 = vrot.lane.b32.xlu1 %v913_v51, %s4533_s0  ;;  %v3431_v52 = vpop.f32.mrb[11].mxu0  ;;  %s4553_s0 = smov 104  }
 0x7a9   :  { %v919_v53 = vpop.permute.xlu1 %918 }
 0x7aa   :  { %v929_v55 = vsel %vm252_vm3, %v4053_v47, %v919_v53  ;;  %v3197_v47 = vld [vmem:[%s4547_s1 + $0x20] sm:$0xff] }
 0x7ab   :  { %v3674_v63 = vpack.c.bf16 %v3198_v62, %v3197_v47 }
 0x7ad   :  { %v923_v54 = vpop.permute.xlu0 %922 }
 0x7ae   :  { %v930_v56 = vsel %vm82_vm1, %v929_v55, %v923_v54 }
 0x7b1   :  { %v927_v57 = vpop.permute.xlu1 %926 }
 0x7b2   :  { %v932_v58 = vsel %vm931_vm5, %v930_v56, %v927_v57 }
 0x7b3   :  { %3441 = vmatmul.mubr.msk.f32.vlgmr.msra.gmra.mrb[8].mxu1 %vm175_vm2, %v932_v58 }
 0x7b4   :  { %3470 = vmatprep.mubr.msk.f32.mxu1 %vm3824_vm0, %v3825_v4  ;;  %3675 = vmatpush3.bf16.msra.mxu1 %v3674_v63 }
 0x7b5   :  { %3676 = vmatprep.subr.bf16.mxu1 %v3823_v2 }
 0x7b8   :  { %3678 = vmatpush3.bf16.msra.mxu1 %v3677_v9 }
 0x7b9   :  { %3473 = vmatprep.subr.mxu1 %v3825_v4 }
 0x886   :  { %v1013_v1 = vpop.f32.mrb[8].mxu1 }
 0x887   :  { %v1014_v3 = vadd.f32 %v3193_v0, %v1013_v1  ;;  %v3442_v5 = vpop.f32.mrb[9].mxu1 }
 0x889   :  { %v1017_v6 = vmax.f32 %v1014_v3, 0.0 }
 0x88b   :  { %3460 = vmatmul.mubr.msk.f32.vlgmr.msra.gmra.mrb[12].mxu0 %vm1033_vm6, %v1017_v6 }
 0x88c   :  { %3480 = vmatprep.mubr.msk.f32.mxu0 %vm3824_vm0, %v3825_v4 }
 0x95e   :  { %v1103_v11 = vpop.f32.mrb[12].mxu0 }
 0x95f   :  { %v1104_v12 = vadd.f32 %v3195_v10, %v1103_v11  ;;  %v3461_v13 = vpop.f32.mrb[13].mxu0 }
 0x961   :  { %v1107_v15 = vadd.f32 %v1104_v12, %v3995_v14 }
 0x963   :  { %3471 = vmatmul.mubr.msk.f32.vlgmr.msra.gmra.mrb[10].mxu1 %vm175_vm2, %v1107_v15 }
 0x964   :  { %3475 = vmatprep.mubr.msk.f32.mxu1 %vm3824_vm0, %v3825_v4 }
 0xa36   :  { %v1190_v17 = vpop.f32.mrb[10].mxu1 }
 0xa37   :  { %v4164_v18 = vadd.f32 %v3202_v16, %v1190_v17  ;;  %v3472_v19 = vpop.f32.mrb[11].mxu1 }
 0xa39   :  { %1362 = vrot.lane.b32.xlu1 %v4164_v18, %s4535_s2  ;;  %1195 = vrot.lane.b32.xlu0 %v4164_v18, %s3827_s26 }
 0xa3d   :  { %1529 = vrot.lane.b32.xlu1 %v4164_v18, %s4537_s3  ;;  %1360 = vrot.lane.b32.xlu0 %v4164_v18, %s3829_s27  ;;  %s4558_s3 = smov 24  }
 0xa41   :  { %1696 = vrot.lane.b32.xlu1 %v4164_v18, %s4551_s25  ;;  %1527 = vrot.lane.b32.xlu0 %v4164_v18, %s4552_s7 }
 0xa45   :  { %1694 = vrot.lane.b32.xlu0 %v4164_v18, %s4553_s0 }
 0xaab   :  { %v1363_v14 = vpop.permute.xlu1 %1362  ;;  %v1196_v21 = vpop.permute.xlu0 %1195 }
 0xaac   :  { %3474 = vmatpush3.xpose.msk.msra.mxu1 %vm252_vm3, %v1196_v21 }
 0xaad   :  { %3483 = vmatprep.subr.mxu1 %v3825_v4 }
 0xaaf   :  { %3476 = vmatmul.mubr.msk.f32.vlgmr.msra.gmra.mrb[12].mxu1 %vm252_vm3, %v4164_v18  ;;  %v1361_v22 = vpop.permute.xlu0 %1360  ;;  %v1530_v23 = vpop.permute.xlu1 %1529 }
 0xab0   :  { %3484 = vmatpush3.xpose.msk.msra.mxu1 %vm252_vm3, %v1363_v14  ;;  %3485 = vmatprep.mubr.msk.f32.mxu1 %vm3824_vm0, %v3825_v4 }
 0xab1   :  { %3493 = vmatprep.subr.mxu1 %v3825_v4 }
 0xab3   :  { %3486 = vmatmul.mubr.msk.f32.vlgmr.msra.gmra.mrb[14].mxu1 %vm252_vm3, %v1361_v22  ;;  %v1528_v24 = vpop.permute.xlu0 %1527  ;;  %v1697_v25 = vpop.permute.xlu1 %1696  ;;  %v3216_v22 = vld [vmem:[%s4506_s8 + $0x20] sm:$0xff] }
 0xab4   :  { %3494 = vmatpush3.xpose.msk.msra.mxu1 %vm252_vm3, %v1530_v23  ;;  %3495 = vmatprep.mubr.msk.f32.mxu1 %vm3824_vm0, %v3825_v4  ;;  %v3217_v23 = vld [vmem:[%s4506_s8 + $0x28] sm:$0xff] }
 0xab5   :  { %3503 = vmatprep.subr.mxu1 %v3825_v4 }
 0xab7   :  { %3496 = vmatmul.mubr.msk.f32.vlgmr.msra.gmra.mrb[16].mxu1 %vm252_vm3, %v1528_v24  ;;  %v1695_v26 = vpop.permute.xlu0 %1694  ;;  %v3680_v24 = vpack.c.bf16 %v3217_v23, %v3216_v22 }
 0xab8   :  { %3504 = vmatpush3.xpose.msk.msra.mxu1 %vm252_vm3, %v1697_v25  ;;  %3505 = vmatprep.mubr.msk.f32.mxu1 %vm3824_vm0, %v3825_v4 }
 0xab9   :  { %3679 = vmatprep.subr.bf16.mxu1 %v3823_v2 }
 0xabb   :  { %3506 = vmatmul.mubr.msk.f32.vlgmr.msra.gmra.mrb[18].mxu1 %vm252_vm3, %v1695_v26 }
 0xabc   :  { %3521 = vmatprep.mubr.msk.f32.mxu1 %vm3824_vm0, %v3825_v4  ;;  %3681 = vmatpush3.bf16.msra.mxu1 %v3680_v24 }
 0xabd   :  { %3682 = vmatprep.subr.bf16.mxu1 %v3823_v2 }
 0xb82   :  { %v1267_v27 = vpop.f32.mrb[12].mxu1 }
 0xb83   :  { %v1271_v20 = vmul.f32 0.35355338, %v1267_v27  ;;  %v3477_v29 = vpop.f32.mrb[13].mxu1 }
 0xb84   :  { %v3218_v29 = vld [vmem:[%s4506_s8 + $0x30] sm:$0xff] }
 0xb85   :  { %v1272_v30 = vadd.f32 %v1271_v20, %v4024_v28 }
 0xb86   :  { %v1434_v31 = vpop.f32.mrb[14].mxu1 }
 0xb87   :  { %v1438_v32 = vmul.f32 0.35355338, %v1434_v31  ;;  %v3487_v33 = vpop.f32.mrb[15].mxu1  ;;  %v1273_v34 = vsel %vm252_vm3, %v1272_v30, -inf }
 0xb88   :  { %1274 = vmax.xlane.f32.xlu1 %v1273_v34  ;;  %v3224_v33 = vld [vmem:[%s4508_s10 + $0x48] sm:$0xff]  ;;  %v3225_v34 = vld [vmem:[%s4508_s10 + $0x50] sm:$0xff] }
 0xb89   :  { %v1439_v35 = vadd.f32 %v1438_v32, %v4024_v28  ;;  %v3223_v32 = vld [vmem:[%s4508_s10 + $0x40] sm:$0xff] }
 0xb8a   :  { %v1601_v36 = vpop.f32.mrb[16].mxu1 }
 0xb8b   :  { %v1605_v37 = vmul.f32 0.35355338, %v1601_v36  ;;  %v3497_v38 = vpop.f32.mrb[17].mxu1  ;;  %v1440_v39 = vsel %vm252_vm3, %v1439_v35, -inf  ;;  %v3226_v36 = vld [vmem:[%s4508_s10 + $0x58] sm:$0xff] }
 0xb8c   :  { %1441 = vmax.xlane.f32.xlu0 %v1440_v39  ;;  %v3227_v38 = vld [vmem:[%s4508_s10 + $0x60] sm:$0xff]  ;;  %v3228_v39 = vld [vmem:[%s4508_s10 + $0x68] sm:$0xff] }
 0xb8d   :  { %v1606_v40 = vadd.f32 %v1605_v37, %v4024_v28  ;;  %v3689_v37 = vpack.c.bf16 %v3226_v36, %v3225_v34 }
 0xb8e   :  { %v1768_v41 = vpop.f32.mrb[18].mxu1 }
 0xb8f   :  { %v1772_v42 = vmul.f32 0.35355338, %v1768_v41  ;;  %v3507_v43 = vpop.f32.mrb[19].mxu1  ;;  %v1607_v44 = vsel %vm252_vm3, %v1606_v40, -inf  ;;  %v3692_v41 = vpack.c.bf16 %v3228_v39, %v3227_v38 }
 0xb90   :  { %1608 = vmax.xlane.f32.xlu0 %v1607_v44 }
 0xb91   :  { %v1773_v45 = vadd.f32 %v1772_v42, %v4024_v28 }
 0xb93   :  { %v1774_v46 = vsel %vm252_vm3, %v1773_v45, -inf }
 0xb94   :  { %1775 = vmax.xlane.f32.xlu1 %v1774_v46 }
 0xba5   :  { %1451 = vrot.lane.b32.xlu1 %v4164_v18, %s4554_s30  ;;  %s4559_s30 = sld [smem:[#allocation6_spill]] }
 0xc15   :  { %v1275_v48 = vpop.xlane.xlu1 %1274 }
 0xc16   :  { %v1276_v49 = vsub.f32 %v1272_v30, %v1275_v48  ;;  %v3219_v30 = vld [vmem:[%s4506_s8 + $0x38] sm:$0xff] }
 0xc17   :  { %v3683_v31 = vpack.c.bf16 %v3219_v30, %v3218_v29 }
 0xc18   :  { %v1277_v50 = vmul.f32 1.442695, %v1276_v49 }
 0xc19   :  { %v1442_v51 = vpop.xlane.xlu0 %1441  ;;  %3684 = vmatpush3.bf16.msra.mxu1 %v3683_v31 }
 0xc1a   :  { %3767 = vpow2.f32 %v1277_v50  ;;  %v1443_v52 = vsub.f32 %v1439_v35, %v1442_v51  ;;  %3697 = vmatprep.subr.bf16.mxu1 %v3823_v2  ;;  %v3686_v35 = vpack.c.bf16 %v3224_v33, %v3223_v32 }
 0xc1c   :  { %v1444_v53 = vmul.f32 1.442695, %v1443_v52  ;;  %v3229_v52 = vld [vmem:[%s4508_s10 + $0x70] sm:$0xff] }
 0xc1d   :  { %v1609_v62 = vpop.xlane.xlu0 %1608 }
 0xc1e   :  { %3769 = vpow2.f32 %v1444_v53  ;;  %v1610_v63 = vsub.f32 %v1606_v40, %v1609_v62  ;;  %v3230_v53 = vld [vmem:[%s4508_s10 + $0x78] sm:$0xff]  ;;  %v2140_v62 = vld [vmem:[%s4512_s14] sm:$0xff] }
 0xc20   :  { %v1611_v0 = vmul.f32 1.442695, %v1610_v63  ;;  %v2141_v63 = vld [vmem:[%s4512_s14 + $0x8] sm:$0xff] }
 0xc21   :  { %v1776_v54 = vpop.xlane.xlu1 %1775 }
 0xc22   :  { %v1777_v55 = vsub.f32 %v1773_v45, %v1776_v54  ;;  %v3695_v54 = vpack.c.bf16 %v3230_v53, %v3229_v52 }
 0xc24   :  { %v3768_v56 = vpop.eup %3767  ;;  %v1778_v57 = vmul.f32 1.442695, %v1777_v55  ;;  %v2056_v55 = vld [vmem:[%s4510_s12] sm:$0xff] }
 0xc25   :  { %v1279_v58 = vsel %vm252_vm3, %v3768_v56, 0.0  ;;  %v1452_v5 = vpop.permute.xlu1 %1451 }
 0xc26   :  { %3771 = vpow2.f32 %v1778_v57  ;;  %1280 = vadd.xlane.f32.xlu0 %v1279_v58  ;;  %v2058_v57 = vld [vmem:[%s4510_s12 + $0x10] sm:$0xff] }
 0xc27   :  { %3773 = vpow2.f32 %v1611_v0 }
 0xc28   :  { %v3770_v59 = vpop.eup %3769 }
 0xc29   :  { %v1446_v60 = vsel %vm252_vm3, %v3770_v59, 0.0 }
 0xc2a   :  { %1447 = vadd.xlane.f32.xlu1 %v1446_v60 }
 0xc30   :  { %v3772_v61 = vpop.eup %3771 }
 0xc31   :  { %v1780_v47 = vsel %vm252_vm3, %v3772_v61, 0.0  ;;  %v3774_v1 = vpop.eup %3773 }
 0xc32   :  { %1781 = vadd.xlane.f32.xlu1 %v1780_v47  ;;  %v1613_v3 = vsel %vm252_vm3, %v3774_v1, 0.0 }
 0xc3c   :  { %1284 = vrot.lane.b32.xlu0 %v4164_v18, %s4555_s23 }
 0xc43   :  { %1618 = vrot.lane.b32.xlu1 %v4164_v18, %s4556_s5 }
 0xc5b   :  { %1614 = vadd.xlane.f32.xlu0 %v1613_v3  ;;  %v3221_v3 = vld [vmem:[%s4507_s9 + $0x1] ss:$0 sm:$0xff] }
 0xc71   :  { %1785 = vrot.lane.b32.xlu0 %v4164_v18, %s4557_s28 }
 0xcb3   :  { %v1281_v6 = vpop.xlane.xlu0 %1280 }
 0xcb4   :  { %3775 = vrcp.f32 %v1281_v6 }
 0xcb7   :  { %v1285_v7 = vpop.permute.xlu0 %1284  ;;  %v1448_v8 = vpop.xlane.xlu1 %1447 }
 0xcb8   :  { %3777 = vrcp.f32 %v1448_v8  ;;  %3479 = vmatpush3.msra.mxu0 %v1285_v7 }
 0xcb9   :  { %3488 = vmatprep.subr.mxu0 %v3825_v4 }
 0xcbe   :  { %v3776_v9 = vpop.eup %3775 }
 0xcbf   :  { %v1283_v10 = vmul.f32 %v3776_v9, %v3768_v56  ;;  %v1782_v11 = vpop.xlane.xlu1 %1781  ;;  %v2057_v56 = vld [vmem:[%s4510_s12 + $0x8] sm:$0xff]  ;;  %v2142_v9 = vld [vmem:[%s4512_s14 + $0x10] sm:$0xff] }
 0xcc0   :  { %v3698_v58 = vpack.c.bf16 %v2057_v56, %v2056_v55 }
 0xcc1   :  { %3481 = vmatmul.mubr.msk.f32.vlgmr.msra.gmra.mrb[14].mxu0 %vm252_vm3, %v1283_v10  ;;  %v2143_v10 = vld [vmem:[%s4512_s14 + $0x18] sm:$0xff] }
 0xcc2   :  { %v3778_v12 = vpop.eup %3777  ;;  %3489 = vmatpush3.msra.mxu0 %v1452_v5  ;;  %3490 = vmatprep.mubr.msk.f32.mxu0 %vm3824_vm0, %v3825_v4 }
 0xcc3   :  { %v1450_v13 = vmul.f32 %v3778_v12, %v3770_v59  ;;  %v1619_v15 = vpop.permute.xlu1 %1618  ;;  %3498 = vmatprep.subr.mxu0 %v3825_v4  ;;  %v2059_v59 = vld [vmem:[%s4510_s12 + $0x18] sm:$0xff]  ;;  %v3234_v12 = vld [vmem:[%s4511_s13] ss:$0 sm:$0xff] }
 0xcc4   :  { %v3701_v60 = vpack.c.bf16 %v2059_v59, %v2058_v57 }
 0xcc5   :  { %3491 = vmatmul.mubr.msk.f32.vlgmr.msra.gmra.mrb[16].mxu0 %vm252_vm3, %v1450_v13 }
 0xcc6   :  { %3499 = vmatpush3.msra.mxu0 %v1619_v15  ;;  %3500 = vmatprep.mubr.msk.f32.mxu0 %vm3824_vm0, %v3825_v4 }
 0xcc7   :  { %3508 = vmatprep.subr.mxu0 %v3825_v4 }
 0xce8   :  { %v1615_v16 = vpop.xlane.xlu0 %1614 }
 0xce9   :  { %3779 = vrcp.f32 %v1615_v16 }
 0xcea   :  { %3781 = vrcp.f32 %v1782_v11  ;;  %v3707_v11 = vpack.c.bf16 %v2143_v10, %v2142_v9 }
 0xcec   :  { %v1786_v14 = vpop.permute.xlu0 %1785 }
 0xcf3   :  { %v3780_v17 = vpop.eup %3779 }
 0xcf4   :  { %v1617_v18 = vmul.f32 %v3780_v17, %v3774_v1  ;;  %v3782_v19 = vpop.eup %3781  ;;  %v3704_v1 = vpack.c.bf16 %v2141_v63, %v2140_v62  ;;  %v3232_v17 = vld [vmem:[%s4509_s11 + $0x1] ss:$0 sm:$0xff]  ;;  %s4561_s11 = smov 80  }
 0xcf5   :  { %v1784_v21 = vmul.f32 %v3782_v19, %v3772_v61  ;;  %v2053_v61 = vld [vmem:[%s4559_s30] sm:$0xff] }
 0xcf6   :  { %3501 = vmatmul.mubr.msk.f32.vlgmr.msra.gmra.mrb[18].mxu0 %vm252_vm3, %v1617_v18 }
 0xcf7   :  { %3509 = vmatpush3.msra.mxu0 %v1786_v14  ;;  %3510 = vmatprep.mubr.msk.f32.mxu0 %vm3824_vm0, %v3825_v4 }
 0xcf8   :  { %3685 = vmatprep.subr.bf16.mxu0 %v3823_v2 }
 0xcfa   :  { %3511 = vmatmul.mubr.msk.f32.vlgmr.msra.gmra.mrb[20].mxu0 %vm252_vm3, %v1784_v21  ;;  %v3236_v21 = vld [vmem:[%s4513_s15] ss:$0 sm:$0xff]  ;;  %s4562_s15 = smov 88  }
 0xcfb   :  { %3540 = vmatprep.mubr.msk.f32.mxu0 %vm3824_vm0, %v3825_v4  ;;  %3687 = vmatpush3.bf16.msra.mxu0 %v3686_v35 }
 0xcfc   :  { %3688 = vmatprep.subr.bf16.mxu0 %v3823_v2 }
 0xcff   :  { %3690 = vmatpush3.bf16.msra.mxu0 %v3689_v37 }
 0xd00   :  { %3691 = vmatprep.subr.bf16.mxu0 %v3823_v2 }
 0xd03   :  { %3693 = vmatpush3.bf16.msra.mxu0 %v3692_v41 }
 0xd04   :  { %3694 = vmatprep.subr.bf16.mxu0 %v3823_v2 }
 0xd07   :  { %3696 = vmatpush3.bf16.msra.mxu0 %v3695_v54 }
 0xd08   :  { %3565 = vmatprep.subr.mxu0 %v3825_v4 }
 0xd94   :  { %v1356_v25 = vpop.f32.mrb[14].mxu0 }
 0xd95   :  { %v3482_v26 = vpop.f32.mrb[15].mxu0 }
 0xd98   :  { %v1523_v27 = vpop.f32.mrb[16].mxu0 }
 0xd99   :  { %1862 = vrot.lane.b32.xlu1 %v1523_v27, %s4536_s4  ;;  %v3492_v20 = vpop.f32.mrb[17].mxu0 }
 0xdc9   :  { %v1690_v40 = vpop.f32.mrb[18].mxu0 }
 0xdca   :  { %1866 = vrot.lane.b32.xlu0 %v1690_v40, %s4538_s24  ;;  %v3502_v42 = vpop.f32.mrb[19].mxu0  ;;  %s4560_s24 = sld [smem:[#allocation8_spill]] }
 0xdcd   :  { %v1857_v43 = vpop.f32.mrb[20].mxu0 }
 0xdce   :  { %1870 = vrot.lane.b32.xlu1 %v1857_v43, %s4558_s3  ;;  %v3512_v44 = vpop.f32.mrb[21].mxu0 }
 0xdd0   :  { %v2054_v47 = vld [vmem:[%s4560_s24] sm:$0xff] }
 0xdd1   :  { %v2055_v0 = vadd.f32 %v2054_v47, %v2053_v61 }
 0xe0b   :  { %v1863_v45 = vpop.permute.xlu1 %1862 }
 0xe0c   :  { %v1873_v48 = vsel %vm252_vm3, %v1356_v25, %v1863_v45 }
 0xe3c   :  { %v1867_v46 = vpop.permute.xlu0 %1866 }
 0xe3d   :  { %v1874_v49 = vsel %vm82_vm1, %v1873_v48, %v1867_v46 }
 0xe40   :  { %v1871_v50 = vpop.permute.xlu1 %1870 }
 0xe41   :  { %v1875_v51 = vsel %vm931_vm5, %v1874_v49, %v1871_v50 }
 0xe42   :  { %3522 = vmatmul.mubr.msk.f32.vlgmr.msra.gmra.mrb[20].mxu1 %vm175_vm2, %v1875_v51 }
 0xe43   :  { %3551 = vmatprep.mubr.msk.f32.mxu1 %vm3824_vm0, %v3825_v4  ;;  %3699 = vmatpush3.bf16.msra.mxu1 %v3698_v58 }
 0xe44   :  { %3700 = vmatprep.subr.bf16.mxu1 %v3823_v2 }
 0xe47   :  { %3702 = vmatpush3.bf16.msra.mxu1 %v3701_v60 }
 0xe48   :  { %3703 = vmatprep.subr.bf16.mxu1 %v3823_v2 }
 0xe4a   :  { %3552 = vmatmul.mubr.msk.f32.vlgmr.msra.gmra.mrb[22].mxu1 %vm175_vm2, %v2055_v0 }
 0xe4b   :  { %3705 = vmatpush3.bf16.msra.mxu1 %v3704_v1  ;;  %3562 = vmatprep.mubr.msk.f32.mxu1 %vm3824_vm0, %v3825_v4 }
 0xe4c   :  { %3706 = vmatprep.subr.bf16.mxu1 %v3823_v2 }
 0xe4f   :  { %3708 = vmatpush3.bf16.msra.mxu1 %v3707_v11 }
 0xe50   :  { %3575 = vmatprep.subr.mxu1 %v3825_v4 }
 0xf15   :  { %v1958_v5 = vpop.f32.mrb[20].mxu1 }
 0xf16   :  { %v1959_v6 = vadd.f32 %v3221_v3, %v1958_v5  ;;  %v3523_v7 = vpop.f32.mrb[21].mxu1 }
 0xf18   :  { %v1962_v8 = vmax.f32 %v1959_v6, 0.0 }
 0xf1a   :  { %3541 = vmatmul.mubr.msk.f32.vlgmr.msra.gmra.mrb[22].mxu0 %vm1033_vm6, %v1962_v8 }
 0xf1b   :  { %3567 = vmatprep.mubr.msk.f32.mxu0 %vm3824_vm0, %v3825_v4 }
 0xf1d   :  { %v2136_v13 = vpop.f32.mrb[22].mxu1 }
 0xf1e   :  { %v2137_v15 = vadd.f32 %v3234_v12, %v2136_v13  ;;  %v3553_v16 = vpop.f32.mrb[23].mxu1 }
 0xf20   :  { %2389 = vrot.lane.b32.xlu1 %v2137_v15, %s3829_s27 }
 0xf24   :  { %2556 = vrot.lane.b32.xlu1 %v2137_v15, %s4552_s7 }
 0xf28   :  { %2723 = vrot.lane.b32.xlu1 %v2137_v15, %s4553_s0 }
 0xf92   :  { %v2390_v25 = vpop.permute.xlu1 %2389 }
 0xf96   :  { %v2557_v20 = vpop.permute.xlu1 %2556 }
 0xf9a   :  { %v2724_v30 = vpop.permute.xlu1 %2723 }
 0xfed   :  { %v2049_v18 = vpop.f32.mrb[22].mxu0 }
 0xfee   :  { %v2050_v19 = vadd.f32 %v3232_v17, %v2049_v18  ;;  %v3542_v14 = vpop.f32.mrb[23].mxu0 }
 0xff0   :  { %3563 = vmatmul.mubr.msk.f32.vlgmr.msra.gmra.mrb[24].mxu1 %vm175_vm2, %v2050_v19 }
 0xff1   :  { %3577 = vmatprep.mubr.msk.f32.mxu1 %vm3824_vm0, %v3825_v4 }
0x10c3   :  { %v2220_v22 = vpop.f32.mrb[24].mxu1 }
0x10c4   :  { %v4346_v23 = vadd.f32 %v3236_v21, %v2220_v22  ;;  %v3564_v24 = vpop.f32.mrb[25].mxu1 }
0x10c6   :  { %2391 = vrot.lane.b32.xlu0 %v4346_v23, %s3829_s27  ;;  %3566 = vmatpush3.xpose.msk.msra.mxu0 %vm252_vm3, %v4346_v23 }
0x10c7   :  { %3570 = vmatprep.subr.mxu0 %v3825_v4 }
0x10c9   :  { %3568 = vmatmul.mubr.msk.f32.vlgmr.msra.gmra.mrb[24].mxu0 %vm252_vm3, %v2137_v15 }
0x10ca   :  { %2558 = vrot.lane.b32.xlu0 %v4346_v23, %s4552_s7  ;;  %3572 = vmatprep.mubr.msk.f32.mxu0 %vm3824_vm0, %v3825_v4 }
0x10ce   :  { %2725 = vrot.lane.b32.xlu0 %v4346_v23, %s4553_s0 }
0x1138   :  { %v2392_v26 = vpop.permute.xlu0 %2391 }
0x1139   :  { %3576 = vmatpush3.xpose.msk.msra.mxu1 %vm252_vm3, %v2392_v26 }
0x113a   :  { %3585 = vmatprep.subr.mxu1 %v3825_v4 }
0x113c   :  { %3578 = vmatmul.mubr.msk.f32.vlgmr.msra.gmra.mrb[26].mxu1 %vm252_vm3, %v2390_v25  ;;  %v2559_v27 = vpop.permute.xlu0 %2558 }
0x113d   :  { %3586 = vmatpush3.xpose.msk.msra.mxu1 %vm252_vm3, %v2559_v27  ;;  %3587 = vmatprep.mubr.msk.f32.mxu1 %vm3824_vm0, %v3825_v4  ;;  %v2905_v27 = vld [vmem:[%s4514_s16] sm:$0xff] }
0x113e   :  { %3595 = vmatprep.subr.mxu1 %v3825_v4 }
0x1140   :  { %3588 = vmatmul.mubr.msk.f32.vlgmr.msra.gmra.mrb[28].mxu1 %vm252_vm3, %v2557_v20  ;;  %v2726_v29 = vpop.permute.xlu0 %2725  ;;  %v2906_v20 = vld [vmem:[%s4514_s16 + $0x8] sm:$0xff] }
0x1141   :  { %3596 = vmatpush3.xpose.msk.msra.mxu1 %vm252_vm3, %v2726_v29  ;;  %3597 = vmatprep.mubr.msk.f32.mxu1 %vm3824_vm0, %v3825_v4  ;;  %v3710_v29 = vpack.c.bf16 %v2906_v20, %v2905_v27 }
0x1142   :  { %3709 = vmatprep.subr.bf16.mxu1 %v3823_v2 }
0x1144   :  { %3598 = vmatmul.mubr.msk.f32.vlgmr.msra.gmra.mrb[30].mxu1 %vm252_vm3, %v2724_v30  ;;  %v2907_v30 = vld [vmem:[%s4514_s16 + $0x10] sm:$0xff] }
0x1145   :  { %3613 = vmatprep.mubr.msk.f32.mxu1 %vm3824_vm0, %v3825_v4  ;;  %3711 = vmatpush3.bf16.msra.mxu1 %v3710_v29 }
0x1146   :  { %3712 = vmatprep.subr.bf16.mxu1 %v3823_v2 }
0x119c   :  { %v2296_v31 = vpop.f32.mrb[24].mxu0 }
0x119d   :  { %v2300_v32 = vmul.f32 0.35355338, %v2296_v31  ;;  %v3569_v33 = vpop.f32.mrb[25].mxu0  ;;  %v2908_v31 = vld [vmem:[%s4514_s16 + $0x18] sm:$0xff]  ;;  %s4564_s16 = smov 16  }
0x119e   :  { %v2989_v33 = vld [vmem:[%s4516_s18] sm:$0xff] }
0x119f   :  { %v2301_v34 = vadd.f32 %v2300_v32, %v4024_v28  ;;  %v3713_v32 = vpack.c.bf16 %v2908_v31, %v2907_v30 }
0x11a1   :  { %v2302_v35 = vsel %vm252_vm3, %v2301_v34, -inf  ;;  %3714 = vmatpush3.bf16.msra.mxu1 %v3713_v32 }
0x11a2   :  { %2303 = vmax.xlane.f32.xlu0 %v2302_v35  ;;  %3721 = vmatprep.subr.bf16.mxu1 %v3823_v2 }
0x120f   :  { %v2463_v36 = vpop.f32.mrb[26].mxu1 }
0x1210   :  { %v2467_v37 = vmul.f32 0.35355338, %v2463_v36  ;;  %v3579_v38 = vpop.f32.mrb[27].mxu1 }
0x1212   :  { %v2468_v39 = vadd.f32 %v2467_v37, %v4024_v28 }
0x1213   :  { %v2630_v40 = vpop.f32.mrb[28].mxu1 }
0x1214   :  { %v2634_v41 = vmul.f32 0.35355338, %v2630_v40  ;;  %v3589_v42 = vpop.f32.mrb[29].mxu1  ;;  %v2469_v43 = vsel %vm252_vm3, %v2468_v39, -inf }
0x1215   :  { %2470 = vmax.xlane.f32.xlu1 %v2469_v43 }
0x1216   :  { %v2635_v44 = vadd.f32 %v2634_v41, %v4024_v28 }
0x1217   :  { %v2797_v45 = vpop.f32.mrb[30].mxu1 }
0x1218   :  { %v2801_v46 = vmul.f32 0.35355338, %v2797_v45  ;;  %v3599_v48 = vpop.f32.mrb[31].mxu1  ;;  %v2636_v49 = vsel %vm252_vm3, %v2635_v44, -inf }
0x1219   :  { %2637 = vmax.xlane.f32.xlu0 %v2636_v49  ;;  %v2991_v49 = vld [vmem:[%s4516_s18 + $0x10] sm:$0xff] }
0x121a   :  { %v2802_v50 = vadd.f32 %v2801_v46, %v4024_v28 }
0x121c   :  { %v2803_v51 = vsel %vm252_vm3, %v2802_v50, -inf }
0x121d   :  { %2804 = vmax.xlane.f32.xlu0 %v2803_v51 }
0x1226   :  { %2313 = vrot.lane.b32.xlu1 %v4346_v23, %s3827_s26 }
0x122f   :  { %v2304_v52 = vpop.xlane.xlu0 %2303 }
0x1230   :  { %v2305_v53 = vsub.f32 %v2301_v34, %v2304_v52  ;;  %v2990_v34 = vld [vmem:[%s4516_s18 + $0x8] sm:$0xff]  ;;  %v3074_v52 = vld [vmem:[%s4518_s20] sm:$0xff] }
0x1231   :  { %v3716_v35 = vpack.c.bf16 %v2990_v34, %v2989_v33 }
0x1232   :  { %v2306_v54 = vmul.f32 1.442695, %v2305_v53  ;;  %v3075_v53 = vld [vmem:[%s4518_s20 + $0x8] sm:$0xff] }
0x1234   :  { %3783 = vpow2.f32 %v2306_v54  ;;  %v3722_v54 = vpack.c.bf16 %v3075_v53, %v3074_v52 }
0x123e   :  { %v3784_v55 = vpop.eup %3783 }
0x123f   :  { %v2308_v56 = vsel %vm252_vm3, %v3784_v55, 0.0 }
0x124a   :  { %2309 = vadd.xlane.f32.xlu1 %v2308_v56 }
0x12a2   :  { %v2471_v57 = vpop.xlane.xlu1 %2470 }
0x12a3   :  { %v2472_v58 = vsub.f32 %v2468_v39, %v2471_v57  ;;  %v3078_v57 = vld [vmem:[%s4518_s20 + $0x20] sm:$0xff] }
0x12a5   :  { %v2473_v59 = vmul.f32 1.442695, %v2472_v58  ;;  %v3079_v58 = vld [vmem:[%s4518_s20 + $0x28] sm:$0xff] }
0x12a6   :  { %v2314_v60 = vpop.permute.xlu1 %2313  ;;  %v2638_v61 = vpop.xlane.xlu0 %2637 }
0x12a7   :  { %3785 = vpow2.f32 %v2473_v59  ;;  %v2639_v28 = vsub.f32 %v2635_v44, %v2638_v61  ;;  %3571 = vmatpush3.msra.mxu0 %v2314_v60  ;;  %v3728_v59 = vpack.c.bf16 %v3079_v58, %v3078_v57  ;;  %v3250_v60 = vld [vmem:[%s4515_s17] ss:$0 sm:$0xff] }
0x12a8   :  { %3580 = vmatprep.subr.mxu0 %v3825_v4 }
0x12a9   :  { %v2640_v47 = vmul.f32 1.442695, %v2639_v28 }
0x12aa   :  { %v2805_v62 = vpop.xlane.xlu0 %2804 }
0x12ab   :  { %3787 = vpow2.f32 %v2640_v47  ;;  %v2806_v63 = vsub.f32 %v2802_v50, %v2805_v62  ;;  %v2992_v50 = vld [vmem:[%s4516_s18 + $0x18] sm:$0xff]  ;;  %v3080_v62 = vld [vmem:[%s4518_s20 + $0x30] sm:$0xff] }
0x12ac   :  { %v3719_v51 = vpack.c.bf16 %v2992_v50, %v2991_v49 }
0x12ad   :  { %v2807_v0 = vmul.f32 1.442695, %v2806_v63  ;;  %v3081_v63 = vld [vmem:[%s4518_s20 + $0x38] sm:$0xff] }
0x12af   :  { %3789 = vpow2.f32 %v2807_v0  ;;  %v3731_v0 = vpack.c.bf16 %v3081_v63, %v3080_v62 }
0x12b1   :  { %v3786_v1 = vpop.eup %3785 }
0x12b2   :  { %v2475_v3 = vsel %vm252_vm3, %v3786_v1, 0.0 }
0x12b3   :  { %2476 = vadd.xlane.f32.xlu0 %v2475_v3 }
0x12b5   :  { %v3788_v5 = vpop.eup %3787 }
0x12b6   :  { %v2642_v6 = vsel %vm252_vm3, %v3788_v5, 0.0 }
0x12b7   :  { %2643 = vadd.xlane.f32.xlu1 %v2642_v6 }
0x12b9   :  { %v3790_v7 = vpop.eup %3789 }
0x12ba   :  { %v2809_v8 = vsel %vm252_vm3, %v3790_v7, 0.0 }
0x12bb   :  { %2810 = vadd.xlane.f32.xlu0 %v2809_v8 }
0x12c8   :  { %2647 = vrot.lane.b32.xlu1 %v4346_v23, %s4561_s11 }
0x12cc   :  { %2814 = vrot.lane.b32.xlu1 %v4346_v23, %s4551_s25 }
0x12d1   :  { %2480 = vrot.lane.b32.xlu0 %v4346_v23, %s4562_s15 }
0x12d7   :  { %v2310_v9 = vpop.xlane.xlu1 %2309 }
0x12d8   :  { %3791 = vrcp.f32 %v2310_v9 }
0x12e2   :  { %v3792_v10 = vpop.eup %3791 }
0x12e3   :  { %v2312_v11 = vmul.f32 %v3792_v10, %v3784_v55  ;;  %v3077_v55 = vld [vmem:[%s4518_s20 + $0x18] sm:$0xff] }
0x12e5   :  { %3573 = vmatmul.mubr.msk.f32.vlgmr.msra.gmra.mrb[26].mxu0 %vm252_vm3, %v2312_v11 }
0x12e6   :  { %3582 = vmatprep.mubr.msk.f32.mxu0 %vm3824_vm0, %v3825_v4 }
0x1340   :  { %v2477_v12 = vpop.xlane.xlu0 %2476 }
0x1341   :  { %3793 = vrcp.f32 %v2477_v12 }
0x1344   :  { %v2644_v13 = vpop.xlane.xlu1 %2643 }
0x1345   :  { %3795 = vrcp.f32 %v2644_v13 }
0x1348   :  { %v2811_v15 = vpop.xlane.xlu0 %2810  ;;  %v2648_v18 = vpop.permute.xlu1 %2647 }
0x1349   :  { %3797 = vrcp.f32 %v2811_v15 }
0x134b   :  { %v3794_v16 = vpop.eup %3793 }
0x134c   :  { %v2479_v17 = vmul.f32 %v3794_v16, %v3786_v1  ;;  %v2481_v19 = vpop.permute.xlu0 %2480  ;;  %v2815_v22 = vpop.permute.xlu1 %2814 }
0x134d   :  { %3581 = vmatpush3.msra.mxu0 %v2481_v19 }
0x134e   :  { %3583 = vmatmul.mubr.msk.f32.vlgmr.msra.gmra.mrb[28].mxu0 %vm252_vm3, %v2479_v17  ;;  %3590 = vmatprep.subr.mxu0 %v3825_v4 }
0x134f   :  { %v3796_v14 = vpop.eup %3795  ;;  %3591 = vmatpush3.msra.mxu0 %v2648_v18  ;;  %3592 = vmatprep.mubr.msk.f32.mxu0 %vm3824_vm0, %v3825_v4 }
0x1350   :  { %v2646_v21 = vmul.f32 %v3796_v14, %v3788_v5  ;;  %3600 = vmatprep.subr.mxu0 %v3825_v4 }
0x1352   :  { %3593 = vmatmul.mubr.msk.f32.vlgmr.msra.gmra.mrb[30].mxu0 %vm252_vm3, %v2646_v21 }
0x1353   :  { %v3798_v23 = vpop.eup %3797  ;;  %3601 = vmatpush3.msra.mxu0 %v2815_v22  ;;  %3602 = vmatprep.mubr.msk.f32.mxu0 %vm3824_vm0, %v3825_v4 }
0x1354   :  { %v2813_v24 = vmul.f32 %v3798_v23, %v3790_v7  ;;  %3715 = vmatprep.subr.bf16.mxu0 %v3823_v2  ;;  %v3254_v7 = vld [vmem:[%s4519_s21] ss:$0 sm:$0xff] }
0x1356   :  { %3603 = vmatmul.mubr.msk.f32.vlgmr.msra.gmra.mrb[32].mxu0 %vm252_vm3, %v2813_v24 }
0x1357   :  { %3624 = vmatprep.mubr.msk.f32.mxu0 %vm3824_vm0, %v3825_v4  ;;  %3717 = vmatpush3.bf16.msra.mxu0 %v3716_v35 }
0x1358   :  { %3718 = vmatprep.subr.bf16.mxu0 %v3823_v2 }
0x135b   :  { %3720 = vmatpush3.bf16.msra.mxu0 %v3719_v51 }
0x13b8   :  { %v2385_v25 = vpop.f32.mrb[26].mxu0 }
0x13b9   :  { %v3574_v26 = vpop.f32.mrb[27].mxu0 }
0x1421   :  { %v2552_v36 = vpop.f32.mrb[28].mxu0 }
0x1422   :  { %2891 = vrot.lane.b32.xlu0 %v2552_v36, %s4563_s6  ;;  %v3584_v37 = vpop.f32.mrb[29].mxu0 }
0x1425   :  { %v2719_v38 = vpop.f32.mrb[30].mxu0 }
0x1426   :  { %2895 = vrot.lane.b32.xlu1 %v2719_v38, %s4564_s16  ;;  %v3594_v39 = vpop.f32.mrb[31].mxu0  ;;  %s3840_s16 = smov [#allocation2]  }
0x1427   :  { %s3169_s10 = sshll.u32 %s3840_s16, 4  ;;  %s3170_s10 = int_to_ptr.vmem [resolvable:$true] %s3169_s10 }
0x1428   :  { %p3804_p1 = scmp.lt.s32.totalorder %s3170_s10, %s3170_s10 }
0x1429   :  { %v2886_v40 = vpop.f32.mrb[32].mxu0 }
0x142a   :  { %2899 = vrot.lane.b32.xlu0 %v2886_v40, %s4558_s3  ;;  %v3604_v41 = vpop.f32.mrb[33].mxu0 }
0x1494   :  { %v2892_v42 = vpop.permute.xlu0 %2891 }
0x1495   :  { %v2902_v44 = vsel %vm252_vm3, %v2385_v25, %v2892_v42 }
0x1498   :  { %v2896_v43 = vpop.permute.xlu1 %2895 }
0x1499   :  { %v2903_v45 = vsel %vm82_vm1, %v2902_v44, %v2896_v43 }
0x149c   :  { %v2900_v46 = vpop.permute.xlu0 %2899 }
0x149d   :  { %v2904_v48 = vsel %vm931_vm5, %v2903_v45, %v2900_v46 }
0x149e   :  { %3614 = vmatmul.mubr.msk.f32.vlgmr.msra.gmra.mrb[32].mxu1 %vm175_vm2, %v2904_v48 }
0x149f   :  { %3643 = vmatprep.mubr.msk.f32.mxu1 %vm3824_vm0, %v3825_v4  ;;  %v3076_v4 = vld [vmem:[%s4518_s20 + $0x10] sm:$0xff]  ;;  %3723 = vmatpush3.bf16.msra.mxu1 %v3722_v54  ;;  %s3799_s20 = scalar_lea.vmem %s3170_s10, 128 }
0x14a0   :  { %v3725_v56 = vpack.c.bf16 %v3077_v55, %v3076_v4  ;;  %3724 = vmatprep.subr.bf16.mxu1 %v3823_v2  ;;  %p3800_p0 = scmp.ne.s32.totalorder %s3170_s10, %s3799_s20  ;;  %p3805_p2 = scmp.lt.s32.totalorder %s3799_s20, %s3799_s20 }
0x14a2   :  { %p3806_p3 = por %p3805_p2, %p3804_p1 }
0x14a3   :  { %3726 = vmatpush3.bf16.msra.mxu1 %v3725_v56 }
0x14a4   :  { %3727 = vmatprep.subr.bf16.mxu1 %v3823_v2  ;;  %p3807_p4 = pnand %p3806_p3, %p3800_p0 }
0x14a7   :  { %3729 = vmatpush3.bf16.msra.mxu1 %v3728_v59 }
0x14a8   :  { %3730 = vmatprep.subr.bf16.mxu1 %v3823_v2  ;;  %v3252_v2 = vld [vmem:[%s4517_s19] ss:$0 sm:$0xff] }
0x14ab   :  { %3732 = vmatpush3.bf16.msra.mxu1 %v3731_v0 }
0x1571   :  { %v2985_v61 = vpop.f32.mrb[32].mxu1 }
0x1572   :  { %v2986_v28 = vadd.f32 %v3250_v60, %v2985_v61  ;;  %v3615_v47 = vpop.f32.mrb[33].mxu1 }
0x1574   :  { %3625 = vmatmul.mubr.msk.f32.vlgmr.msra.gmra.mrb[34].mxu0 %vm175_vm2, %v2986_v28 }
0x1647   :  { %v3069_v1 = vpop.f32.mrb[34].mxu0 }
0x1648   :  { %v3070_v3 = vadd.f32 %v3252_v2, %v3069_v1  ;;  %v3626_v5 = vpop.f32.mrb[35].mxu0 }
0x164a   :  { %v3073_v6 = vmax.f32 %v3070_v3, 0.0 }
0x164c   :  { %3644 = vmatmul.mubr.msk.f32.vlgmr.msra.gmra.mrb[34].mxu1 %vm1033_vm6, %v3073_v6 }
0x171f   :  { %v3158_v8 = vpop.f32.mrb[34].mxu1 }
0x1720   :  { %v3159_v9 = vadd.f32 %v3254_v7, %v3158_v8  ;;  %v3645_v10 = vpop.f32.mrb[35].mxu1 }
0x1722   :  { %3162 = vst.msk [vmem:[#allocation2] sm:$0xff] %vm175_vm2, %v3159_v9 }
0x1723   :  { %3810 = shalt.err (!%p3807_p4)
}
0x1724   :  { %s3811_s3 = scalar_lea.hbm %s4520_s22, 128 }
0x1725   :  { %p3812_p5 = scmp.ne.s32.totalorder %s4520_s22, %s3811_s3  ;;  %p3815_p6 = scmp.lt.u32.totalorder %s3811_s3, %s4520_s22 }
0x1727   :  { %p3817_p7 = pnand %p3815_p6, %p3812_p5 }
0x1729   :  { %3820 = shalt.err (!%p3817_p7)
}
0x172a   :  { %3172 = dma.vmem_to_hbm [thread:$0]  %s3170_s10, 128, %s4520_s22, [#allocation3]  }
0x172b   :  { %3821 = dma.done.wait [#allocation3], 128  }
0x172c   :  { %3822 = vsyncadd [#allocation3], 4294967168 }
0x172d   :  { %3176 = vsyncpa [#allocation3], 1 }

</bundles_post_ra>
